<compile_context>
chip_gen: v5e
topology: v5e:2x2
jax: 0.10.0
libtpu: 0.0.40
codegen_flags: <defaults>
</compile_context>

<pallas_src>
from functools import lru_cache

import numpy as np
import jax
import jax.numpy as jnp
from jax.experimental import pallas as pl
from jax.experimental.pallas import tpu as pltpu

EPS = 1e-5


def _erf_approx(x):
    # Abramowitz & Stegun 7.1.26, |err| <= 1.5e-7 (only exp / mul / add / div).
    a1, a2, a3, a4, a5 = (0.254829592, -0.284496736, 1.421413741,
                          -1.453152027, 1.061405429)
    p = 0.3275911
    s = jnp.where(x < 0.0, -1.0, 1.0)
    ax = jnp.abs(x)
    t = 1.0 / (1.0 + p * ax)
    poly = ((((a5 * t + a4) * t + a3) * t + a2) * t + a1) * t
    return s * (1.0 - poly * jnp.exp(-ax * ax))


def _gelu(x):
    # exact (erf-based) GELU, matching nn.GELU() default
    return 0.5 * x * (1.0 + _erf_approx(x * 0.7071067811865476))


def _make_up_kernel(img_w, nhw, c2, c1, mid, cout):
    """Fused concat + (conv3x3 -> BN -> GELU) x2; all sizes static Python ints."""
    cin = c1 + c2
    sh_ym = img_w % nhw          # dy=-1 tap: act[p-W] = roll(act, +W)[p]
    sh_yp = (nhw - img_w) % nhw  # dy=+1 tap: act[p+W] = roll(act, -W)[p]

    def kernel(x2_ref, x1_ref, w1_ref, w2_ref, g1_ref, b1_ref,
               g2_ref, b2_ref, mask_ref, out_ref, col1_ref, col2_ref):
        # mask rows: 0 -> (y>0), 1 -> (y<H-1), 2 -> (x>0), 3 -> (x<W-1)

        def write_dy_taps(col_ref, row_stride, base, act):
            # Write the three dy-shifted copies of `act` into the column
            # scratch at rows [ky*row_stride + base : ... + act.shape[0]].
            c = act.shape[0]
            col_ref[base:base + c, :] = (
                pltpu.roll(act, sh_ym, axis=1) * mask_ref[0:1, :])        # dy=-1
            col_ref[row_stride + base:row_stride + base + c, :] = act     # dy= 0
            col_ref[2 * row_stride + base:2 * row_stride + base + c, :] = (
                pltpu.roll(act, sh_yp, axis=1) * mask_ref[1:2, :])        # dy=+1

        def conv_bn_gelu(col_ref, w_ref, g_ref, b_ref, co):
            # One fat MXU matmul produces the dx=-1/0/+1 partials stacked on
            # sublanes; the +-1 lane shifts are applied to the small outputs.
            part = jnp.dot(w_ref[...], col_ref[...],
                           preferred_element_type=jnp.float32)   # (3*co, nhw)
            y = (part[co:2 * co, :]
                 + pltpu.roll(part[0:co, :], 1, axis=1) * mask_ref[2:3, :]
                 + pltpu.roll(part[2 * co:3 * co, :], nhw - 1, axis=1)
                 * mask_ref[3:4, :])
            # two-pass training-mode batch statistics (biased variance)
            inv_n = 1.0 / nhw
            mean = jnp.sum(y, axis=1, keepdims=True) * inv_n
            d = y - mean
            var = jnp.sum(d * d, axis=1, keepdims=True) * inv_n
            y = d * (g_ref[...] * jax.lax.rsqrt(var + EPS)) + b_ref[...]
            return _gelu(y)

        # conv1: channel concat([x2, x1_up]) folded into the scratch row layout
        write_dy_taps(col1_ref, cin, 0, x2_ref[...])
        write_dy_taps(col1_ref, cin, c2, x1_ref[...])
        a1 = conv_bn_gelu(col1_ref, w1_ref, g1_ref, b1_ref, mid)

        # conv2
        write_dy_taps(col2_ref, mid, 0, a1)
        out_ref[...] = conv_bn_gelu(col2_ref, w2_ref, g2_ref, b2_ref, cout)

    return kernel


# ----------------------------- host-side helpers -----------------------------
def _interp_matrix(n_in, n_up, n_total, pad_before):
    """Bilinear align_corners=True upsample (n_in -> n_up) embedded in n_total
    rows with zero rows for the F.pad border."""
    m = np.zeros((n_total, n_in), np.float32)
    for o in range(n_up):
        src = 0.0 if (n_up == 1 or n_in == 1) else o * (n_in - 1) / (n_up - 1)
        i0 = min(int(np.floor(src)), n_in - 1)
        f = src - i0
        i1 = min(i0 + 1, n_in - 1)
        m[pad_before + o, i0] += 1.0 - f
        m[pad_before + o, i1] += f
    return m


def _edge_masks(n, h, w):
    """(4, N*H*W) 0/1 masks: rows = [y>0, y<H-1, x>0, x<W-1]."""
    f = np.arange(n * h * w)
    y = (f // w) % h
    x = f % w
    return np.stack([y > 0, y < h - 1, x > 0, x < w - 1]).astype(np.float32)


@lru_cache(maxsize=None)
def _spatial_constants(n, h1, w1, h2, w2):
    diff_y, diff_x = h2 - 2 * h1, w2 - 2 * w1
    uh = _interp_matrix(h1, 2 * h1, h2, diff_y // 2)   # (H2, H1), pad rows zero
    uw = _interp_matrix(w1, 2 * w1, w2, diff_x // 2)   # (W2, W1), pad rows zero
    return (jnp.asarray(uh), jnp.asarray(uw),
            jnp.asarray(_edge_masks(n, h2, w2)))


@jax.jit
def _up_forward_impl(x1, x2, w1, g1, b1, w2, g2, b2, uh, uw, masks):
    n, c1, _, _ = x1.shape
    _, c2, h2, w2s = x2.shape
    cin = c1 + c2
    mid, cout = w1.shape[0], w2.shape[0]
    nhw = n * h2 * w2s
    hi = jax.lax.Precision.HIGHEST

    # separable bilinear 2x upsample (+ pad folded into zero rows of uh/uw)
    x1 = x1.astype(jnp.float32)
    t = jnp.einsum('ncyx,wx->ncyw', x1, uw, precision=hi)   # width  (N,C1,H1,W2)
    x1u = jnp.einsum('hy,ncyw->nchw', uh, t, precision=hi)  # height (N,C1,H2,W2)

    # channel-major flattening: N*H*W (multiple of 128) on the lane axis
    x1uf = jnp.transpose(x1u, (1, 0, 2, 3)).reshape(c1, nhw)
    x2f = jnp.transpose(x2, (1, 0, 2, 3)).reshape(c2, nhw).astype(jnp.float32)

    # (O, I, ky, kx) -> (3*O, 3*I): row = kx*O + o, col = ky*I + i
    w1a = jnp.transpose(w1, (3, 0, 2, 1)).reshape(3 * mid, 3 * cin).astype(jnp.float32)
    w2a = jnp.transpose(w2, (3, 0, 2, 1)).reshape(3 * cout, 3 * mid).astype(jnp.float32)

    col = lambda v: v.reshape(-1, 1).astype(jnp.float32)
    vspec = lambda: pl.BlockSpec(memory_space=pltpu.MemorySpace.VMEM)

    out_flat = pl.pallas_call(
        _make_up_kernel(w2s, nhw, c2, c1, mid, cout),
        out_shape=jax.ShapeDtypeStruct((cout, nhw), jnp.float32),
        in_specs=[vspec() for _ in range(9)],
        out_specs=vspec(),
        scratch_shapes=[pltpu.VMEM((3 * cin, nhw), jnp.float32),
                        pltpu.VMEM((3 * mid, nhw), jnp.float32)],
    )(x2f, x1uf, w1a, w2a, col(g1), col(b1), col(g2), col(b2), masks)

    return jnp.transpose(out_flat.reshape(cout, n, h2, w2s), (1, 0, 2, 3))


def up_forward(x1, x2, w1, g1, b1, w2, g2, b2):
    """Pallas forward of Up: x1 (N,C1,H1,W1), x2 (N,C2,H2,W2) -> (N,Cout,H2,W2)."""
    n, _, h1, w1s = x1.shape
    _, _, h2, w2s = x2.shape
    uh, uw, masks = _spatial_constants(n, h1, w1s, h2, w2s)
    return _up_forward_impl(x1, x2, w1, g1, b1, w2, g2, b2, uh, uw, masks)


# --------------------- pure-JAX reference (correctness) ----------------------
def ref_up(x1, x2, w1, g1, b1, w2, g2, b2):
    n, c1, h, w = x1.shape
    ho, wo = 2 * h, 2 * w

    def coords(n_in, n_out):
        if n_out == 1 or n_in == 1:
            return jnp.zeros((n_out,), jnp.float32)
        return jnp.arange(n_out, dtype=jnp.float32) * (n_in - 1) / (n_out - 1)

    sy, sx = coords(h, ho), coords(w, wo)
    y0 = jnp.clip(jnp.floor(sy).astype(jnp.int32), 0, h - 1)
    x0 = jnp.clip(jnp.floor(sx).astype(jnp.int32), 0, w - 1)
    y1c = jnp.clip(y0 + 1, 0, h - 1)
    x1c = jnp.clip(x0 + 1, 0, w - 1)
    fy = (sy - y0)[None, None, :, None]
    fx = (sx - x0)[None, None, None, :]
    top = x1[:, :, y0, :] * (1 - fy) + x1[:, :, y1c, :] * fy
    up = top[:, :, :, x0] * (1 - fx) + top[:, :, :, x1c] * fx

    dy = x2.shape[2] - up.shape[2]
    dx = x2.shape[3] - up.shape[3]
    up = jnp.pad(up, ((0, 0), (0, 0),
                      (dy // 2, dy - dy // 2), (dx // 2, dx - dx // 2)))
    x = jnp.concatenate([x2, up], axis=1)

    def conv(a, wgt):
        return jax.lax.conv_general_dilated(
            a, wgt, (1, 1), [(1, 1), (1, 1)],
            dimension_numbers=('NCHW', 'OIHW', 'NCHW'))

    def bn(a, g, b):
        mean = jnp.mean(a, axis=(0, 2, 3), keepdims=True)
        var = jnp.mean((a - mean) ** 2, axis=(0, 2, 3), keepdims=True)
        return ((a - mean) * jax.lax.rsqrt(var + EPS) * g.reshape(1, -1, 1, 1)
                + b.reshape(1, -1, 1, 1))

    def gelu_exact(a):
        return 0.5 * a * (1.0 + jax.scipy.special.erf(a * 0.7071067811865476))

    x = gelu_exact(bn(conv(x, w1), g1, b1))
    x = gelu_exact(bn(conv(x, w2), g2, b2))
    return x


if __name__ == "__main__":
    # Up(in_channels=32, out_channels=16): x1 is the low-res map, x2 the skip;
    # C1 + C2 == in_channels, upsampled x1 matches x2's spatial size (diff=0).
    N, C1, H1, W1 = 2, 16, 8, 8
    C2, H2, W2 = 16, 16, 16
    in_ch, mid, out_ch = C1 + C2, (C1 + C2) // 2, 16

    keys = jax.random.split(jax.random.PRNGKey(0), 8)
    x1 = jax.random.normal(keys[0], (N, C1, H1, W1), jnp.float32)
    x2 = jax.random.normal(keys[1], (N, C2, H2, W2), jnp.float32)
    w1 = 0.2 * jax.random.normal(keys[2], (mid, in_ch, 3, 3), jnp.float32)
    g1 = 1.0 + 0.1 * jax.random.normal(keys[3], (mid,), jnp.float32)
    b1 = 0.1 * jax.random.normal(keys[4], (mid,), jnp.float32)
    w2 = 0.2 * jax.random.normal(keys[5], (out_ch, mid, 3, 3), jnp.float32)
    g2 = 1.0 + 0.1 * jax.random.normal(keys[6], (out_ch,), jnp.float32)
    b2 = 0.1 * jax.random.normal(keys[7], (out_ch,), jnp.float32)

    out = up_forward(x1, x2, w1, g1, b1, w2, g2, b2)
    out = jax.block_until_ready(out)

    ref = ref_up(x1, x2, w1, g1, b1, w2, g2, b2)
    assert out.shape == (N, out_ch, H2, W2)
    err = float(jnp.max(jnp.abs(out - ref)))
    assert jnp.allclose(out, ref, rtol=2e-4, atol=2e-4), f"max abs err = {err}"

    print("KERNEL_OK")
</pallas_src>

<mosaic_0001>
module attributes {stable_mosaic.version = 11 : i64} {
  func.func @kernel(%arg0: memref<16x512xf32, #tpu.memory_space<vmem>>, %arg1: memref<16x512xf32, #tpu.memory_space<vmem>>, %arg2: memref<48x96xf32, #tpu.memory_space<vmem>>, %arg3: memref<48x48xf32, #tpu.memory_space<vmem>>, %arg4: memref<16x1xf32, #tpu.memory_space<vmem>>, %arg5: memref<16x1xf32, #tpu.memory_space<vmem>>, %arg6: memref<16x1xf32, #tpu.memory_space<vmem>>, %arg7: memref<16x1xf32, #tpu.memory_space<vmem>>, %arg8: memref<4x512xf32, #tpu.memory_space<vmem>>, %arg9: memref<16x512xf32, #tpu.memory_space<vmem>>, %arg10: memref<96x512xf32, #tpu.memory_space<vmem>>, %arg11: memref<48x512xf32, #tpu.memory_space<vmem>>) attributes {dimension_semantics = [], scalar_prefetch = 0 : i64, scratch_operands = 2 : i64, tpu.core_type = #tpu.core_type<tc>} {
    %c0 = arith.constant 0 : index
    %c0_0 = arith.constant 0 : index
    %0 = vector.load %arg0[%c0, %c0_0] : memref<16x512xf32, #tpu.memory_space<vmem>>, vector<16x512xf32>
    %c16_i32 = arith.constant 16 : i32
    %1 = tpu.dynamic_rotate %0 by %c16_i32 dim 1 : vector<16x512xf32>, i32 -> vector<16x512xf32>
    %c0_1 = arith.constant 0 : index
    %c0_2 = arith.constant 0 : index
    %2 = vector.load %arg8[%c0_1, %c0_2] : memref<4x512xf32, #tpu.memory_space<vmem>>, vector<1x512xf32>
    %3 = vector.broadcast %2 : vector<1x512xf32> to vector<16x512xf32>
    %4 = arith.mulf %1, %3 : vector<16x512xf32>
    %c0_3 = arith.constant 0 : index
    %c0_4 = arith.constant 0 : index
    %5 = vector.load %arg10[%c0_3, %c0_4] : memref<96x512xf32, #tpu.memory_space<vmem>>, vector<16x512xf32>
    tpu.vector_store %arg10[%c0_3, %c0_4], %4 {strides = array<i32>} : memref<96x512xf32, #tpu.memory_space<vmem>>, vector<16x512xf32>,
    %c32 = arith.constant 32 : index
    %c0_5 = arith.constant 0 : index
    %6 = vector.load %arg10[%c32, %c0_5] : memref<96x512xf32, #tpu.memory_space<vmem>>, vector<16x512xf32>
    tpu.vector_store %arg10[%c32, %c0_5], %0 {strides = array<i32>} : memref<96x512xf32, #tpu.memory_space<vmem>>, vector<16x512xf32>,
    %c496_i32 = arith.constant 496 : i32
    %7 = tpu.dynamic_rotate %0 by %c496_i32 dim 1 : vector<16x512xf32>, i32 -> vector<16x512xf32>
    %c1 = arith.constant 1 : index
    %c0_6 = arith.constant 0 : index
    %8 = vector.load %arg8[%c1, %c0_6] : memref<4x512xf32, #tpu.memory_space<vmem>>, vector<1x512xf32>
    %9 = vector.broadcast %8 : vector<1x512xf32> to vector<16x512xf32>
    %10 = arith.mulf %7, %9 : vector<16x512xf32>
    %c64 = arith.constant 64 : index
    %c0_7 = arith.constant 0 : index
    %11 = vector.load %arg10[%c64, %c0_7] : memref<96x512xf32, #tpu.memory_space<vmem>>, vector<16x512xf32>
    tpu.vector_store %arg10[%c64, %c0_7], %10 {strides = array<i32>} : memref<96x512xf32, #tpu.memory_space<vmem>>, vector<16x512xf32>,
    %c0_8 = arith.constant 0 : index
    %c0_9 = arith.constant 0 : index
    %12 = vector.load %arg1[%c0_8, %c0_9] : memref<16x512xf32, #tpu.memory_space<vmem>>, vector<16x512xf32>
    %c16_i32_10 = arith.constant 16 : i32
    %13 = tpu.dynamic_rotate %12 by %c16_i32_10 dim 1 : vector<16x512xf32>, i32 -> vector<16x512xf32>
    %c0_11 = arith.constant 0 : index
    %c0_12 = arith.constant 0 : index
    %14 = vector.load %arg8[%c0_11, %c0_12] : memref<4x512xf32, #tpu.memory_space<vmem>>, vector<1x512xf32>
    %15 = vector.broadcast %14 : vector<1x512xf32> to vector<16x512xf32>
    %16 = arith.mulf %13, %15 : vector<16x512xf32>
    %c16 = arith.constant 16 : index
    %c0_13 = arith.constant 0 : index
    %17 = vector.load %arg10[%c16, %c0_13] : memref<96x512xf32, #tpu.memory_space<vmem>>, vector<16x512xf32>
    tpu.vector_store %arg10[%c16, %c0_13], %16 {strides = array<i32>} : memref<96x512xf32, #tpu.memory_space<vmem>>, vector<16x512xf32>,
    %c48 = arith.constant 48 : index
    %c0_14 = arith.constant 0 : index
    %18 = vector.load %arg10[%c48, %c0_14] : memref<96x512xf32, #tpu.memory_space<vmem>>, vector<16x512xf32>
    tpu.vector_store %arg10[%c48, %c0_14], %12 {strides = array<i32>} : memref<96x512xf32, #tpu.memory_space<vmem>>, vector<16x512xf32>,
    %c496_i32_15 = arith.constant 496 : i32
    %19 = tpu.dynamic_rotate %12 by %c496_i32_15 dim 1 : vector<16x512xf32>, i32 -> vector<16x512xf32>
    %c1_16 = arith.constant 1 : index
    %c0_17 = arith.constant 0 : index
    %20 = vector.load %arg8[%c1_16, %c0_17] : memref<4x512xf32, #tpu.memory_space<vmem>>, vector<1x512xf32>
    %21 = vector.broadcast %20 : vector<1x512xf32> to vector<16x512xf32>
    %22 = arith.mulf %19, %21 : vector<16x512xf32>
    %c80 = arith.constant 80 : index
    %c0_18 = arith.constant 0 : index
    %23 = vector.load %arg10[%c80, %c0_18] : memref<96x512xf32, #tpu.memory_space<vmem>>, vector<16x512xf32>
    tpu.vector_store %arg10[%c80, %c0_18], %22 {strides = array<i32>} : memref<96x512xf32, #tpu.memory_space<vmem>>, vector<16x512xf32>,
    %c0_19 = arith.constant 0 : index
    %c0_20 = arith.constant 0 : index
    %24 = vector.load %arg2[%c0_19, %c0_20] : memref<48x96xf32, #tpu.memory_space<vmem>>, vector<48x96xf32>
    %c0_21 = arith.constant 0 : index
    %c0_22 = arith.constant 0 : index
    %25 = vector.load %arg10[%c0_21, %c0_22] : memref<96x512xf32, #tpu.memory_space<vmem>>, vector<96x512xf32>
    %cst = arith.constant dense<0.000000e+00> : vector<48x512xf32>
    %26 = tpu.matmul %24, %25, %cst {dimension_numbers = #tpu.dot_dimension_numbers<[1], [0], [0], [1], [0, 0, 1, 1], [], []>} : vector<48x96xf32>, vector<96x512xf32>, vector<48x512xf32> -> vector<48x512xf32>
    %27 = vector.extract_strided_slice %26 {offsets = [16, 0], sizes = [16, 512], strides = [1, 1]} : vector<48x512xf32> to vector<16x512xf32>
    %28 = vector.extract_strided_slice %26 {offsets = [0, 0], sizes = [16, 512], strides = [1, 1]} : vector<48x512xf32> to vector<16x512xf32>
    %c1_i32 = arith.constant 1 : i32
    %29 = tpu.dynamic_rotate %28 by %c1_i32 dim 1 : vector<16x512xf32>, i32 -> vector<16x512xf32>
    %c2 = arith.constant 2 : index
    %c0_23 = arith.constant 0 : index
    %30 = vector.load %arg8[%c2, %c0_23] : memref<4x512xf32, #tpu.memory_space<vmem>>, vector<1x512xf32>
    %31 = vector.broadcast %30 : vector<1x512xf32> to vector<16x512xf32>
    %32 = arith.mulf %29, %31 : vector<16x512xf32>
    %33 = arith.addf %27, %32 : vector<16x512xf32>
    %34 = vector.extract_strided_slice %26 {offsets = [32, 0], sizes = [16, 512], strides = [1, 1]} : vector<48x512xf32> to vector<16x512xf32>
    %c511_i32 = arith.constant 511 : i32
    %35 = tpu.dynamic_rotate %34 by %c511_i32 dim 1 : vector<16x512xf32>, i32 -> vector<16x512xf32>
    %c3 = arith.constant 3 : index
    %c0_24 = arith.constant 0 : index
    %36 = vector.load %arg8[%c3, %c0_24] : memref<4x512xf32, #tpu.memory_space<vmem>>, vector<1x512xf32>
    %37 = vector.broadcast %36 : vector<1x512xf32> to vector<16x512xf32>
    %38 = arith.mulf %35, %37 : vector<16x512xf32>
    %39 = arith.addf %33, %38 : vector<16x512xf32>
    %cst_25 = arith.constant dense<0.000000e+00> : vector<16xf32>
    %40 = vector.multi_reduction <add>, %39, %cst_25 [1] : vector<16x512xf32> to vector<16xf32>
    %41 = vector.shape_cast %40 : vector<16xf32> to vector<16x1xf32>
    %cst_26 = arith.constant 0.001953125 : f32
    %42 = vector.broadcast %cst_26 : f32 to vector<16x1xf32>
    %43 = arith.mulf %41, %42 : vector<16x1xf32>
    %44 = vector.broadcast %43 : vector<16x1xf32> to vector<16x512xf32>
    %45 = arith.subf %39, %44 : vector<16x512xf32>
    %46 = arith.mulf %45, %45 : vector<16x512xf32>
    %cst_27 = arith.constant dense<0.000000e+00> : vector<16xf32>
    %47 = vector.multi_reduction <add>, %46, %cst_27 [1] : vector<16x512xf32> to vector<16xf32>
    %48 = vector.shape_cast %47 : vector<16xf32> to vector<16x1xf32>
    %cst_28 = arith.constant 0.001953125 : f32
    %49 = vector.broadcast %cst_28 : f32 to vector<16x1xf32>
    %50 = arith.mulf %48, %49 : vector<16x1xf32>
    %c0_29 = arith.constant 0 : index
    %c0_30 = arith.constant 0 : index
    %51 = vector.load %arg4[%c0_29, %c0_30] : memref<16x1xf32, #tpu.memory_space<vmem>>, vector<16x1xf32>
    %cst_31 = arith.constant 9.99999974E-6 : f32
    %52 = vector.broadcast %cst_31 : f32 to vector<16x1xf32>
    %53 = arith.addf %50, %52 : vector<16x1xf32>
    %54 = math.rsqrt %53 : vector<16x1xf32>
    %55 = arith.mulf %51, %54 : vector<16x1xf32>
    %56 = vector.broadcast %55 : vector<16x1xf32> to vector<16x512xf32>
    %57 = arith.mulf %45, %56 : vector<16x512xf32>
    %c0_32 = arith.constant 0 : index
    %c0_33 = arith.constant 0 : index
    %58 = vector.load %arg5[%c0_32, %c0_33] : memref<16x1xf32, #tpu.memory_space<vmem>>, vector<16x1xf32>
    %59 = vector.broadcast %58 : vector<16x1xf32> to vector<16x512xf32>
    %60 = arith.addf %57, %59 : vector<16x512xf32>
    %cst_34 = arith.constant 5.000000e-01 : f32
    %61 = vector.broadcast %cst_34 : f32 to vector<16x512xf32>
    %62 = arith.mulf %61, %60 : vector<16x512xf32>
    %cst_35 = arith.constant 0.707106769 : f32
    %63 = vector.broadcast %cst_35 : f32 to vector<16x512xf32>
    %64 = arith.mulf %60, %63 : vector<16x512xf32>
    %cst_36 = arith.constant 0.000000e+00 : f32
    %65 = vector.broadcast %cst_36 : f32 to vector<16x512xf32>
    %66 = arith.cmpf olt, %64, %65 : vector<16x512xf32>
    %cst_37 = arith.constant -1.000000e+00 : f32
    %cst_38 = arith.constant 1.000000e+00 : f32
    %67 = vector.broadcast %cst_37 : f32 to vector<16x512xf32>
    %68 = vector.broadcast %cst_38 : f32 to vector<16x512xf32>
    %69 = arith.select %66, %67, %68 : vector<16x512xi1>, vector<16x512xf32>
    %70 = math.absf %64 : vector<16x512xf32>
    %cst_39 = arith.constant 0.327591091 : f32
    %71 = vector.broadcast %cst_39 : f32 to vector<16x512xf32>
    %72 = arith.mulf %71, %70 : vector<16x512xf32>
    %cst_40 = arith.constant 1.000000e+00 : f32
    %73 = vector.broadcast %cst_40 : f32 to vector<16x512xf32>
    %74 = arith.addf %73, %72 : vector<16x512xf32>
    %cst_41 = arith.constant 1.000000e+00 : f32
    %75 = vector.broadcast %cst_41 : f32 to vector<16x512xf32>
    %76 = arith.divf %75, %74 : vector<16x512xf32>
    %cst_42 = arith.constant 1.06140542 : f32
    %77 = vector.broadcast %cst_42 : f32 to vector<16x512xf32>
    %78 = arith.mulf %77, %76 : vector<16x512xf32>
    %cst_43 = arith.constant -1.45315206 : f32
    %79 = vector.broadcast %cst_43 : f32 to vector<16x512xf32>
    %80 = arith.addf %78, %79 : vector<16x512xf32>
    %81 = arith.mulf %80, %76 : vector<16x512xf32>
    %cst_44 = arith.constant 1.42141378 : f32
    %82 = vector.broadcast %cst_44 : f32 to vector<16x512xf32>
    %83 = arith.addf %81, %82 : vector<16x512xf32>
    %84 = arith.mulf %83, %76 : vector<16x512xf32>
    %cst_45 = arith.constant -0.284496725 : f32
    %85 = vector.broadcast %cst_45 : f32 to vector<16x512xf32>
    %86 = arith.addf %84, %85 : vector<16x512xf32>
    %87 = arith.mulf %86, %76 : vector<16x512xf32>
    %cst_46 = arith.constant 0.254829586 : f32
    %88 = vector.broadcast %cst_46 : f32 to vector<16x512xf32>
    %89 = arith.addf %87, %88 : vector<16x512xf32>
    %90 = arith.mulf %89, %76 : vector<16x512xf32>
    %cst_47 = arith.constant 0.000000e+00 : f32
    %91 = vector.broadcast %cst_47 : f32 to vector<16x512xf32>
    %92 = arith.subf %91, %70 : vector<16x512xf32>
    %93 = arith.mulf %92, %70 : vector<16x512xf32>
    %94 = math.exp %93 : vector<16x512xf32>
    %95 = arith.mulf %90, %94 : vector<16x512xf32>
    %cst_48 = arith.constant 1.000000e+00 : f32
    %96 = vector.broadcast %cst_48 : f32 to vector<16x512xf32>
    %97 = arith.subf %96, %95 : vector<16x512xf32>
    %98 = arith.mulf %69, %97 : vector<16x512xf32>
    %cst_49 = arith.constant 1.000000e+00 : f32
    %99 = vector.broadcast %cst_49 : f32 to vector<16x512xf32>
    %100 = arith.addf %99, %98 : vector<16x512xf32>
    %101 = arith.mulf %62, %100 : vector<16x512xf32>
    %c16_i32_50 = arith.constant 16 : i32
    %102 = tpu.dynamic_rotate %101 by %c16_i32_50 dim 1 : vector<16x512xf32>, i32 -> vector<16x512xf32>
    %c0_51 = arith.constant 0 : index
    %c0_52 = arith.constant 0 : index
    %103 = vector.load %arg8[%c0_51, %c0_52] : memref<4x512xf32, #tpu.memory_space<vmem>>, vector<1x512xf32>
    %104 = vector.broadcast %103 : vector<1x512xf32> to vector<16x512xf32>
    %105 = arith.mulf %102, %104 : vector<16x512xf32>
    %c0_53 = arith.constant 0 : index
    %c0_54 = arith.constant 0 : index
    %106 = vector.load %arg11[%c0_53, %c0_54] : memref<48x512xf32, #tpu.memory_space<vmem>>, vector<16x512xf32>
    tpu.vector_store %arg11[%c0_53, %c0_54], %105 {strides = array<i32>} : memref<48x512xf32, #tpu.memory_space<vmem>>, vector<16x512xf32>,
    %c16_55 = arith.constant 16 : index
    %c0_56 = arith.constant 0 : index
    %107 = vector.load %arg11[%c16_55, %c0_56] : memref<48x512xf32, #tpu.memory_space<vmem>>, vector<16x512xf32>
    tpu.vector_store %arg11[%c16_55, %c0_56], %101 {strides = array<i32>} : memref<48x512xf32, #tpu.memory_space<vmem>>, vector<16x512xf32>,
    %c496_i32_57 = arith.constant 496 : i32
    %108 = tpu.dynamic_rotate %101 by %c496_i32_57 dim 1 : vector<16x512xf32>, i32 -> vector<16x512xf32>
    %c1_58 = arith.constant 1 : index
    %c0_59 = arith.constant 0 : index
    %109 = vector.load %arg8[%c1_58, %c0_59] : memref<4x512xf32, #tpu.memory_space<vmem>>, vector<1x512xf32>
    %110 = vector.broadcast %109 : vector<1x512xf32> to vector<16x512xf32>
    %111 = arith.mulf %108, %110 : vector<16x512xf32>
    %c32_60 = arith.constant 32 : index
    %c0_61 = arith.constant 0 : index
    %112 = vector.load %arg11[%c32_60, %c0_61] : memref<48x512xf32, #tpu.memory_space<vmem>>, vector<16x512xf32>
    tpu.vector_store %arg11[%c32_60, %c0_61], %111 {strides = array<i32>} : memref<48x512xf32, #tpu.memory_space<vmem>>, vector<16x512xf32>,
    %c0_62 = arith.constant 0 : index
    %c0_63 = arith.constant 0 : index
    %113 = vector.load %arg3[%c0_62, %c0_63] : memref<48x48xf32, #tpu.memory_space<vmem>>, vector<48x48xf32>
    %c0_64 = arith.constant 0 : index
    %c0_65 = arith.constant 0 : index
    %114 = vector.load %arg11[%c0_64, %c0_65] : memref<48x512xf32, #tpu.memory_space<vmem>>, vector<48x512xf32>
    %cst_66 = arith.constant dense<0.000000e+00> : vector<48x512xf32>
    %115 = tpu.matmul %113, %114, %cst_66 {dimension_numbers = #tpu.dot_dimension_numbers<[1], [0], [0], [1], [0, 0, 1, 1], [], []>} : vector<48x48xf32>, vector<48x512xf32>, vector<48x512xf32> -> vector<48x512xf32>
    %116 = vector.extract_strided_slice %115 {offsets = [16, 0], sizes = [16, 512], strides = [1, 1]} : vector<48x512xf32> to vector<16x512xf32>
    %117 = vector.extract_strided_slice %115 {offsets = [0, 0], sizes = [16, 512], strides = [1, 1]} : vector<48x512xf32> to vector<16x512xf32>
    %c1_i32_67 = arith.constant 1 : i32
    %118 = tpu.dynamic_rotate %117 by %c1_i32_67 dim 1 : vector<16x512xf32>, i32 -> vector<16x512xf32>
    %c2_68 = arith.constant 2 : index
    %c0_69 = arith.constant 0 : index
    %119 = vector.load %arg8[%c2_68, %c0_69] : memref<4x512xf32, #tpu.memory_space<vmem>>, vector<1x512xf32>
    %120 = vector.broadcast %119 : vector<1x512xf32> to vector<16x512xf32>
    %121 = arith.mulf %118, %120 : vector<16x512xf32>
    %122 = arith.addf %116, %121 : vector<16x512xf32>
    %123 = vector.extract_strided_slice %115 {offsets = [32, 0], sizes = [16, 512], strides = [1, 1]} : vector<48x512xf32> to vector<16x512xf32>
    %c511_i32_70 = arith.constant 511 : i32
    %124 = tpu.dynamic_rotate %123 by %c511_i32_70 dim 1 : vector<16x512xf32>, i32 -> vector<16x512xf32>
    %c3_71 = arith.constant 3 : index
    %c0_72 = arith.constant 0 : index
    %125 = vector.load %arg8[%c3_71, %c0_72] : memref<4x512xf32, #tpu.memory_space<vmem>>, vector<1x512xf32>
    %126 = vector.broadcast %125 : vector<1x512xf32> to vector<16x512xf32>
    %127 = arith.mulf %124, %126 : vector<16x512xf32>
    %128 = arith.addf %122, %127 : vector<16x512xf32>
    %cst_73 = arith.constant dense<0.000000e+00> : vector<16xf32>
    %129 = vector.multi_reduction <add>, %128, %cst_73 [1] : vector<16x512xf32> to vector<16xf32>
    %130 = vector.shape_cast %129 : vector<16xf32> to vector<16x1xf32>
    %cst_74 = arith.constant 0.001953125 : f32
    %131 = vector.broadcast %cst_74 : f32 to vector<16x1xf32>
    %132 = arith.mulf %130, %131 : vector<16x1xf32>
    %133 = vector.broadcast %132 : vector<16x1xf32> to vector<16x512xf32>
    %134 = arith.subf %128, %133 : vector<16x512xf32>
    %135 = arith.mulf %134, %134 : vector<16x512xf32>
    %cst_75 = arith.constant dense<0.000000e+00> : vector<16xf32>
    %136 = vector.multi_reduction <add>, %135, %cst_75 [1] : vector<16x512xf32> to vector<16xf32>
    %137 = vector.shape_cast %136 : vector<16xf32> to vector<16x1xf32>
    %cst_76 = arith.constant 0.001953125 : f32
    %138 = vector.broadcast %cst_76 : f32 to vector<16x1xf32>
    %139 = arith.mulf %137, %138 : vector<16x1xf32>
    %c0_77 = arith.constant 0 : index
    %c0_78 = arith.constant 0 : index
    %140 = vector.load %arg6[%c0_77, %c0_78] : memref<16x1xf32, #tpu.memory_space<vmem>>, vector<16x1xf32>
    %cst_79 = arith.constant 9.99999974E-6 : f32
    %141 = vector.broadcast %cst_79 : f32 to vector<16x1xf32>
    %142 = arith.addf %139, %141 : vector<16x1xf32>
    %143 = math.rsqrt %142 : vector<16x1xf32>
    %144 = arith.mulf %140, %143 : vector<16x1xf32>
    %145 = vector.broadcast %144 : vector<16x1xf32> to vector<16x512xf32>
    %146 = arith.mulf %134, %145 : vector<16x512xf32>
    %c0_80 = arith.constant 0 : index
    %c0_81 = arith.constant 0 : index
    %147 = vector.load %arg7[%c0_80, %c0_81] : memref<16x1xf32, #tpu.memory_space<vmem>>, vector<16x1xf32>
    %148 = vector.broadcast %147 : vector<16x1xf32> to vector<16x512xf32>
    %149 = arith.addf %146, %148 : vector<16x512xf32>
    %cst_82 = arith.constant 5.000000e-01 : f32
    %150 = vector.broadcast %cst_82 : f32 to vector<16x512xf32>
    %151 = arith.mulf %150, %149 : vector<16x512xf32>
    %cst_83 = arith.constant 0.707106769 : f32
    %152 = vector.broadcast %cst_83 : f32 to vector<16x512xf32>
    %153 = arith.mulf %149, %152 : vector<16x512xf32>
    %cst_84 = arith.constant 0.000000e+00 : f32
    %154 = vector.broadcast %cst_84 : f32 to vector<16x512xf32>
    %155 = arith.cmpf olt, %153, %154 : vector<16x512xf32>
    %cst_85 = arith.constant -1.000000e+00 : f32
    %cst_86 = arith.constant 1.000000e+00 : f32
    %156 = vector.broadcast %cst_85 : f32 to vector<16x512xf32>
    %157 = vector.broadcast %cst_86 : f32 to vector<16x512xf32>
    %158 = arith.select %155, %156, %157 : vector<16x512xi1>, vector<16x512xf32>
    %159 = math.absf %153 : vector<16x512xf32>
    %cst_87 = arith.constant 0.327591091 : f32
    %160 = vector.broadcast %cst_87 : f32 to vector<16x512xf32>
    %161 = arith.mulf %160, %159 : vector<16x512xf32>
    %cst_88 = arith.constant 1.000000e+00 : f32
    %162 = vector.broadcast %cst_88 : f32 to vector<16x512xf32>
    %163 = arith.addf %162, %161 : vector<16x512xf32>
    %cst_89 = arith.constant 1.000000e+00 : f32
    %164 = vector.broadcast %cst_89 : f32 to vector<16x512xf32>
    %165 = arith.divf %164, %163 : vector<16x512xf32>
    %cst_90 = arith.constant 1.06140542 : f32
    %166 = vector.broadcast %cst_90 : f32 to vector<16x512xf32>
    %167 = arith.mulf %166, %165 : vector<16x512xf32>
    %cst_91 = arith.constant -1.45315206 : f32
    %168 = vector.broadcast %cst_91 : f32 to vector<16x512xf32>
    %169 = arith.addf %167, %168 : vector<16x512xf32>
    %170 = arith.mulf %169, %165 : vector<16x512xf32>
    %cst_92 = arith.constant 1.42141378 : f32
    %171 = vector.broadcast %cst_92 : f32 to vector<16x512xf32>
    %172 = arith.addf %170, %171 : vector<16x512xf32>
    %173 = arith.mulf %172, %165 : vector<16x512xf32>
    %cst_93 = arith.constant -0.284496725 : f32
    %174 = vector.broadcast %cst_93 : f32 to vector<16x512xf32>
    %175 = arith.addf %173, %174 : vector<16x512xf32>
    %176 = arith.mulf %175, %165 : vector<16x512xf32>
    %cst_94 = arith.constant 0.254829586 : f32
    %177 = vector.broadcast %cst_94 : f32 to vector<16x512xf32>
    %178 = arith.addf %176, %177 : vector<16x512xf32>
    %179 = arith.mulf %178, %165 : vector<16x512xf32>
    %cst_95 = arith.constant 0.000000e+00 : f32
    %180 = vector.broadcast %cst_95 : f32 to vector<16x512xf32>
    %181 = arith.subf %180, %159 : vector<16x512xf32>
    %182 = arith.mulf %181, %159 : vector<16x512xf32>
    %183 = math.exp %182 : vector<16x512xf32>
    %184 = arith.mulf %179, %183 : vector<16x512xf32>
    %cst_96 = arith.constant 1.000000e+00 : f32
    %185 = vector.broadcast %cst_96 : f32 to vector<16x512xf32>
    %186 = arith.subf %185, %184 : vector<16x512xf32>
    %187 = arith.mulf %158, %186 : vector<16x512xf32>
    %cst_97 = arith.constant 1.000000e+00 : f32
    %188 = vector.broadcast %cst_97 : f32 to vector<16x512xf32>
    %189 = arith.addf %188, %187 : vector<16x512xf32>
    %190 = arith.mulf %151, %189 : vector<16x512xf32>
    %c0_98 = arith.constant 0 : index
    %c0_99 = arith.constant 0 : index
    %191 = vector.load %arg9[%c0_98, %c0_99] : memref<16x512xf32, #tpu.memory_space<vmem>>, vector<16x512xf32>
    tpu.vector_store %arg9[%c0_98, %c0_99], %190 {strides = array<i32>} : memref<16x512xf32, #tpu.memory_space<vmem>>, vector<16x512xf32>,
    return
  }
}

</mosaic_0001>

<bundles_post_ra>
// kernel: _up_forward_impl.1
= control target key start
LH: loop header
LB: loop body
LE: loop exit
PB: predicated region body
PF: predicated region fallthrough
CT: control target
= control target key end

     0   :  { %s1979_s15 = smov 112   ;;  %s1980_s21 = smov 16   ;;  %v56_v18 = vlaneseq  ;;  %vm323_vm2 = vcmask 785408   ;;  %s3315_s1 = inlined_call_operand.vmem [shape: f32[16,512], index: 1, kind: input, shape index: {}]   ;;  %s3316_s0 = inlined_call_operand.vmem [shape: f32[16,512], index: 0, kind: input, shape index: {}]   ;;  %s3317_s8 = inlined_call_operand.vmem [shape: f32[4,512], index: 8, kind: input, shape index: {}]   ;;  %s3318_s2 = inlined_call_operand.vmem [shape: f32[48,96], index: 2, kind: input, shape index: {}]   ;;  %s3319_s5 = inlined_call_operand.vmem [shape: f32[16,1], index: 5, kind: input, shape index: {}]   ;;  %s3320_s4 = inlined_call_operand.vmem [shape: f32[16,1], index: 4, kind: input, shape index: {}]   ;;  %s3321_s3 = inlined_call_operand.vmem [shape: f32[48,48], index: 3, kind: input, shape index: {}]   ;;  %s3322_s7 = inlined_call_operand.vmem [shape: f32[16,1], index: 7, kind: input, shape index: {}]   ;;  %s3323_s6 = inlined_call_operand.vmem [shape: f32[16,1], index: 6, kind: input, shape index: {}]   ;;  %s3324_s9 = inlined_call_operand.vmem [shape: f32[16,512], index: 9, kind: output, shape index: {}]  }
   0x1   :  { %v2038_v0 = vld [vmem:[%s3315_s1 + $0x30] sm:$0xff]  ;;  %v2043_v1 = vld [vmem:[%s3315_s1 + $0x20] sm:$0xff]  ;;  %v2048_v2 = vld [vmem:[%s3315_s1 + $0x18] sm:$0xff]  ;;  %s1982_s20 = smov 127  }
   0x2   :  { %229 = vrot.lane.b32.xlu0 %v2038_v0, %s1979_s15  ;;  %221 = vrot.lane.b32.xlu1 %v2043_v1, %s1979_s15  ;;  %v2059_v3 = vld [vmem:[%s3315_s1 + $0x38] sm:$0xff]  ;;  %v2064_v4 = vld [vmem:[%s3315_s1 + $0x10] sm:$0xff]  ;;  %v2179_v20 = vand.u32 127, %v56_v18 }
   0x3   :  { %231 = vrot.lane.b32.xlu2 %v2048_v2, %s1979_s15  ;;  %v2069_v5 = vld [vmem:[%s3316_s0 + $0x30] sm:$0xff]  ;;  %v2080_v6 = vld [vmem:[%s3315_s1] sm:$0xff]  ;;  %v2085_v7 = vld [vmem:[%s3316_s0 + $0x38] sm:$0xff] }
   0x4   :  { %v2090_v8 = vld [vmem:[%s3316_s0 + $0x20] sm:$0xff]  ;;  %v2101_v9 = vld [vmem:[%s3316_s0 + $0x18] sm:$0xff]  ;;  %v2106_v10 = vld [vmem:[%s3316_s0 + $0x10] sm:$0xff]  ;;  %3333 = vst [vmem:[#allocation4_spill] sm:$0xff] %v2179_v20  ;;  %vm3332_vm0 = vcmp.lt.s32.totalorder %v2179_v20, 112  ;;  %vm3331_vm1 = vcmp.lt.s32.totalorder %v2179_v20, 16 }
   0x5   :  { %v2111_v11 = vld [vmem:[%s3315_s1 + $0x28] sm:$0xff]  ;;  %v2127_v13 = vld [vmem:[%s3316_s0] sm:$0xff]  ;;  %vm3330_vm3 = vcmp.lt.s32.totalorder %v2179_v20, 1  ;;  %vm3329_vm4 = vcmp.lt.s32.totalorder %v2179_v20, 127 }
   0x6   :  { %v2122_v12 = vld [vmem:[%s3315_s1 + $0x8] sm:$0xff] }
   0x7   :  { %v2132_v14 = vld [vmem:[%s3316_s0 + $0x28] sm:$0xff] }
   0x8   :  { %v2143_v15 = vld [vmem:[%s3316_s0 + $0x8] sm:$0xff] }
   0x9   :  { %v1844_v21 = vld [vmem:[%s3317_s8 + $0x1] ss:$4 sm:$0xf] }
   0xa   :  { %233 = vrot.lane.b32.xlu0 %v2059_v3, %s1979_s15  ;;  %227 = vrot.lane.b32.xlu1 %v2064_v4, %s1979_s15  ;;  %v246_v22 = vperm.slane %v1844_v21, 1  ;;  %v245_v23 = vperm.slane %v1844_v21, 0  ;;  %v247_v31 = vperm.slane %v1844_v21, 2  ;;  %v248_v32 = vperm.slane %v1844_v21, 3 }
   0xb   :  { %111 = vrot.lane.b32.xlu2 %v2069_v5, %s1979_s15  ;;  %v1843_v41 = vld [vmem:[%s3317_s8 + $0x1] ss:$4 sm:$0xf] }
   0xc   :  { %v131_v42 = vperm.slane %v1843_v41, 2  ;;  %v132_v46 = vperm.slane %v1843_v41, 3  ;;  %v129_v61 = vperm.slane %v1843_v41, 0  ;;  %v130_v62 = vperm.slane %v1843_v41, 1 }
  0x12   :  { %219 = vrot.lane.b32.xlu1 %v2080_v6, %s1979_s15  ;;  %115 = vrot.lane.b32.xlu0 %v2085_v7, %s1979_s15 }
  0x13   :  { %103 = vrot.lane.b32.xlu2 %v2090_v8, %s1979_s15 }
  0x1a   :  { %113 = vrot.lane.b32.xlu1 %v2101_v9, %s1979_s15  ;;  %109 = vrot.lane.b32.xlu0 %v2106_v10, %s1979_s15 }
  0x1b   :  { %225 = vrot.lane.b32.xlu2 %v2111_v11, %s1979_s15 }
  0x22   :  { %223 = vrot.lane.b32.xlu1 %v2122_v12, %s1979_s15  ;;  %101 = vrot.lane.b32.xlu0 %v2127_v13, %s1979_s15 }
  0x23   :  { %107 = vrot.lane.b32.xlu2 %v2132_v14, %s1979_s15 }
  0x2a   :  { %167 = vrot.lane.b32.xlu1 %v2111_v11, %s1980_s21  ;;  %105 = vrot.lane.b32.xlu0 %v2143_v15, %s1979_s15 }
  0x2b   :  { %171 = vrot.lane.b32.xlu2 %v2038_v0, %s1980_s21 }
  0x32   :  { %169 = vrot.lane.b32.xlu1 %v2064_v4, %s1980_s21  ;;  %165 = vrot.lane.b32.xlu0 %v2122_v12, %s1980_s21 }
  0x33   :  { %175 = vrot.lane.b32.xlu2 %v2059_v3, %s1980_s21 }
  0x3a   :  { %50 = vrot.lane.b32.xlu1 %v2069_v5, %s1980_s21  ;;  %46 = vrot.lane.b32.xlu0 %v2132_v14, %s1980_s21 }
  0x3b   :  { %173 = vrot.lane.b32.xlu2 %v2048_v2, %s1980_s21 }
  0x42   :  { %48 = vrot.lane.b32.xlu1 %v2106_v10, %s1980_s21  ;;  %44 = vrot.lane.b32.xlu0 %v2143_v15, %s1980_s21 }
  0x43   :  { %54 = vrot.lane.b32.xlu2 %v2085_v7, %s1980_s21 }
  0x4a   :  { %52 = vrot.lane.b32.xlu1 %v2101_v9, %s1980_s21  ;;  %163 = vrot.lane.b32.xlu0 %v2043_v1, %s1980_s21 }
  0x4b   :  { %161 = vrot.lane.b32.xlu2 %v2080_v6, %s1980_s21 }
  0x52   :  { %40 = vrot.lane.b32.xlu1 %v2127_v13, %s1980_s21  ;;  %42 = vrot.lane.b32.xlu0 %v2090_v8, %s1980_s21 }
  0x5d   :  { %v232_v16 = vpop.permute.xlu2 %231 }
  0x65   :  { %v112_v17 = vpop.permute.xlu2 %111 }
  0x6d   :  { %v104_v19 = vpop.permute.xlu2 %103 }
  0x74   :  { %v230_v24 = vpop.permute.xlu0 %229  ;;  %v222_v25 = vpop.permute.xlu1 %221 }
  0x75   :  { %v226_v26 = vpop.permute.xlu2 %225 }
  0x76   :  { %v238_v27 = vsel %vm3332_vm0, %v226_v26, %v230_v24  ;;  %v240_v28 = vsel %vm3332_vm0, %v222_v25, %v226_v26 }
  0x77   :  { %v258_v29 = vmul.f32 %v246_v22, %v238_v27  ;;  %v257_v30 = vmul.f32 %v245_v23, %v240_v28 }
  0x79   :  { %381 = vmatpush.msra.mxu1 %v258_v29  ;;  %346 = vmatpush.msra.mxu0 %v257_v30 }
  0x7c   :  { %v234_v33 = vpop.permute.xlu0 %233  ;;  %v228_v34 = vpop.permute.xlu1 %227 }
  0x7d   :  { %v235_v35 = vsel %vm3332_vm0, %v228_v34, %v232_v16  ;;  %v236_v36 = vsel %vm3332_vm0, %v230_v24, %v234_v33  ;;  %v242_v37 = vsel %vm3332_vm0, %v234_v33, %v222_v25  ;;  %v108_v43 = vpop.permute.xlu2 %107 }
  0x7e   :  { %v259_v38 = vmul.f32 %v247_v31, %v236_v36  ;;  %v260_v39 = vmul.f32 %v248_v32, %v242_v37  ;;  %v255_v40 = vmul.f32 %v247_v31, %v235_v35  ;;  %v121_v58 = vsel %vm3332_vm0, %v108_v43, %v112_v17 }
  0x7f   :  { %v123_v63 = vsel %vm3332_vm0, %v104_v19, %v108_v43  ;;  %v142_v26 = vmul.f32 %v130_v62, %v121_v58 }
  0x80   :  { %416 = vmatpush.msra.mxu2 %v259_v38  ;;  %451 = vmatpush.msra.mxu3 %v260_v39 }
  0x82   :  { %417 = vmatpush.msra.mxu2 %v255_v40 }
  0x84   :  { %v220_v44 = vpop.permute.xlu1 %219  ;;  %v116_v45 = vpop.permute.xlu0 %115 }
  0x85   :  { %v241_v47 = vsel %vm3332_vm0, %v232_v16, %v220_v44  ;;  %v119_v48 = vsel %vm3332_vm0, %v112_v17, %v116_v45  ;;  %v125_v49 = vsel %vm3332_vm0, %v116_v45, %v104_v19  ;;  %v172_v55 = vpop.permute.xlu2 %171  ;;  %v141_v19 = vmul.f32 %v129_v61, %v123_v63 }
  0x86   :  { %v143_v50 = vmul.f32 %v131_v42, %v119_v48  ;;  %v256_v51 = vmul.f32 %v248_v32, %v241_v47  ;;  %v144_v52 = vmul.f32 %v132_v46, %v125_v49 }
  0x88   :  { %418 = vmatpush.msra.mxu2 %v143_v50  ;;  %452 = vmatpush.msra.mxu3 %v256_v51 }
  0x8a   :  { %453 = vmatpush.msra.mxu3 %v144_v52 }
  0x8c   :  { %v114_v53 = vpop.permute.xlu1 %113  ;;  %v110_v54 = vpop.permute.xlu0 %109 }
  0x8d   :  { %v118_v56 = vsel %vm3332_vm0, %v110_v54, %v114_v53  ;;  %v2219_v25 = vpop.permute.xlu2 %175 }
  0x8e   :  { %v139_v57 = vmul.f32 %v131_v42, %v118_v56 }
  0x90   :  { %419 = vmatpush.msra.mxu2 %v139_v57 }
  0x92   :  { %420 = vmatpush.msra.mxu2 %v2038_v0 }
  0x94   :  { %v224_v59 = vpop.permute.xlu1 %223  ;;  %v102_v60 = vpop.permute.xlu0 %101  ;;  %421 = vmatpush.msra.mxu2 %v2064_v4  ;;  %v2224_v4 = vld [vmem:[%s3317_s8] ss:$4 sm:$0xf] }
  0x95   :  { %v237_v16 = vsel %vm3332_vm0, %v224_v59, %v228_v34  ;;  %v239_v18 = vsel %vm3332_vm0, %v220_v44, %v224_v59  ;;  %v124_v0 = vsel %vm3332_vm0, %v114_v53, %v102_v60  ;;  %v174_v34 = vpop.permute.xlu2 %173  ;;  %v269_v44 = vld [vmem:[%s3318_s2] sm:$0xff]  ;;  %v187_v48 = vperm.slane %v2224_v4, 0  ;;  %v270_v59 = vld [vmem:[%s3318_s2 + $0x8] sm:$0xff] }
  0x96   :  { %v253_v21 = vmul.f32 %v245_v23, %v239_v18  ;;  %v254_v17 = vmul.f32 %v246_v22, %v237_v16  ;;  %v140_v24 = vmul.f32 %v132_v46, %v124_v0  ;;  %422 = vmatpush.msra.mxu2 %v2069_v5  ;;  %v189_v5 = vperm.slane %v2224_v4, 2 }
  0x97   :  { %v190_v22 = vperm.slane %v2224_v4, 3  ;;  %v178_v23 = vsel %vm3331_vm1, %v172_v55, %v2219_v25  ;;  %v188_v49 = vperm.slane %v2224_v4, 1  ;;  %v271_v4 = vld [vmem:[%s3318_s2 + $0x10] sm:$0xff] }
  0x98   :  { %347 = vmatpush.msra.mxu0 %v253_v21  ;;  %382 = vmatpush.msra.mxu1 %v254_v17 }
  0x99   :  { %454 = vmatpush.msra.mxu3 %v140_v24  ;;  %423 = vmatpush.msra.mxu2 %v2106_v10  ;;  %v202_v33 = vmul.f32 %v190_v22, %v178_v23  ;;  %v274_v23 = vld [vmem:[%s3318_s2 + $0x28] sm:$0xff] }
  0x9a   :  { %348 = vmatpush.msra.mxu0 %v141_v19  ;;  %383 = vmatpush.msra.mxu1 %v142_v26 }
  0x9b   :  { %455 = vmatpush.msra.mxu3 %v2059_v3 }
  0x9c   :  { %v168_v27 = vpop.permute.xlu1 %167  ;;  %v106_v28 = vpop.permute.xlu0 %105 }
  0x9d   :  { %v180_v29 = vsel %vm3331_vm1, %v168_v27, %v172_v55  ;;  %v120_v10 = vsel %vm3332_vm0, %v106_v28, %v110_v54  ;;  %v122_v30 = vsel %vm3332_vm0, %v102_v60, %v106_v28  ;;  %456 = vmatpush.msra.mxu3 %v2048_v2 }
  0x9e   :  { %v137_v3 = vmul.f32 %v129_v61, %v122_v30  ;;  %v138_v31 = vmul.f32 %v130_v62, %v120_v10  ;;  %v201_v32 = vmul.f32 %v189_v5, %v180_v29 }
  0x9f   :  { %457 = vmatpush.msra.mxu3 %v2085_v7 }
  0xa0   :  { %349 = vmatpush.msra.mxu0 %v137_v3  ;;  %384 = vmatpush.msra.mxu1 %v138_v31 }
  0xa1   :  { %424 = vmatpush.msra.mxu2 %v201_v32  ;;  %458 = vmatpush.msra.mxu3 %v2101_v9 }
  0xa2   :  { %350 = vmatpush.msra.mxu0 %v2043_v1  ;;  %385 = vmatpush.msra.mxu1 %v2111_v11  ;;  %v2255_v1 = vld [vmem:[%s3317_s8] ss:$4 sm:$0xf]  ;;  %v55_v11 = vpop.permute.xlu2 %54 }
  0xa3   :  { %459 = vmatpush.msra.mxu3 %v202_v33  ;;  %v72_v9 = vperm.slane %v2255_v1, 3  ;;  %v69_v61 = vperm.slane %v2255_v1, 0  ;;  %v70_v62 = vperm.slane %v2255_v1, 1 }
  0xa4   :  { %v170_v35 = vpop.permute.xlu1 %169  ;;  %v166_v36 = vpop.permute.xlu0 %165  ;;  %351 = vmatpush.msra.mxu0 %v2080_v6  ;;  %386 = vmatpush.msra.mxu1 %v2122_v12  ;;  %v71_v6 = vperm.slane %v2255_v1, 2 }
  0xa5   :  { %v177_v2 = vsel %vm3331_vm1, %v170_v35, %v174_v34  ;;  %v179_v7 = vsel %vm3331_vm1, %v166_v36, %v170_v35 }
  0xa6   :  { %v197_v37 = vmul.f32 %v189_v5, %v179_v7  ;;  %v198_v38 = vmul.f32 %v190_v22, %v177_v2  ;;  %352 = vmatpush.msra.mxu0 %v2090_v8  ;;  %387 = vmatpush.msra.mxu1 %v2132_v14  ;;  %v272_v5 = vld [vmem:[%s3318_s2 + $0x18] sm:$0xff]  ;;  %v273_v22 = vld [vmem:[%s3318_s2 + $0x20] sm:$0xff]  ;;  %s1981_s2 = smov 1  }
  0xa8   :  { %425 = vmatpush.msra.mxu2 %v197_v37  ;;  %460 = vmatpush.msra.mxu3 %v198_v38 }
  0xa9   :  { %353 = vmatpush.msra.mxu0 %v2127_v13  ;;  %388 = vmatpush.msra.mxu1 %v2143_v15 }
  0xaa   :  { %v162_v45 = vpop.permute.xlu2 %161 }
  0xab   :  { %v183_v50 = vsel %vm3331_vm1, %v174_v34, %v162_v45  ;;  %v181_v54 = vsel %vm3331_vm1, %v162_v45, %v166_v36 }
  0xac   :  { %v51_v12 = vpop.permute.xlu1 %50  ;;  %v47_v8 = vpop.permute.xlu0 %46  ;;  %v195_v58 = vmul.f32 %v187_v48, %v183_v50  ;;  %v196_v60 = vmul.f32 %v188_v49, %v181_v54 }
  0xad   :  { %v60_v39 = vsel %vm3331_vm1, %v51_v12, %v55_v11  ;;  %v62_v40 = vsel %vm3331_vm1, %v47_v8, %v51_v12 }
  0xae   :  { %v83_v14 = vmul.f32 %v71_v6, %v62_v40  ;;  %v84_v41 = vmul.f32 %v72_v9, %v60_v39 }
  0xb0   :  { %426 = vmatpush.msra.mxu2 %v83_v14  ;;  %461 = vmatpush.msra.mxu3 %v84_v41 }
  0xb4   :  { %v49_v13 = vpop.permute.xlu1 %48  ;;  %v45_v42 = vpop.permute.xlu0 %44 }
  0xb5   :  { %v61_v15 = vsel %vm3331_vm1, %v45_v42, %v49_v13 }
  0xb6   :  { %v79_v43 = vmul.f32 %v71_v6, %v61_v15 }
  0xb8   :  { %427 = vmatpush.msra.mxu2 %v79_v43 }
  0xb9   :  { %1857 = vmatmul.msk.f32.vlgmr.msra.gmra.mxu2 %vm323_vm2, %v269_v44 }
  0xbc   :  { %v53_v46 = vpop.permute.xlu1 %52  ;;  %v164_v47 = vpop.permute.xlu0 %163 }
  0xbd   :  { %v59_v51 = vsel %vm3331_vm1, %v49_v13, %v53_v46  ;;  %v182_v52 = vsel %vm3331_vm1, %v164_v47, %v168_v27  ;;  %v184_v53 = vsel %vm3331_vm1, %v2219_v25, %v164_v47 }
  0xbe   :  { %v199_v55 = vmul.f32 %v187_v48, %v184_v53  ;;  %v200_v56 = vmul.f32 %v188_v49, %v182_v52  ;;  %v80_v57 = vmul.f32 %v72_v9, %v59_v51  ;;  %v1869_v48 = vld [vmem:[%s3317_s8 + $0x2] ss:$4 sm:$0xf] }
  0xbf   :  { %v510_v50 = vperm.slane %v1869_v48, 0  ;;  %v511_v51 = vperm.slane %v1869_v48, 1 }
  0xc0   :  { %354 = vmatpush.msra.mxu0 %v199_v55  ;;  %389 = vmatpush.msra.mxu1 %v200_v56  ;;  %v1870_v56 = vld [vmem:[%s3317_s8 + $0x3] ss:$4 sm:$0xf] }
  0xc1   :  { %462 = vmatpush.msra.mxu3 %v80_v57  ;;  %1858 = vmatmul.msk.f32.gmra.mxu2 %vm323_vm2, %v270_v59 }
  0xc2   :  { %1863 = vmatmul.msk.f32.vlgmr.msra.gmra.mxu3 %vm323_vm2, %v269_v44  ;;  %355 = vmatpush.msra.mxu0 %v195_v58  ;;  %v563_v58 = vperm.slane %v1870_v56, 1 }
  0xc3   :  { %390 = vmatpush.msra.mxu1 %v196_v60 }
  0xc4   :  { %v41_v63 = vpop.permute.xlu1 %40  ;;  %v43_v16 = vpop.permute.xlu0 %42 }
  0xc5   :  { %v65_v18 = vsel %vm3331_vm1, %v53_v46, %v41_v63  ;;  %v64_v0 = vsel %vm3331_vm1, %v43_v16, %v47_v8  ;;  %v66_v21 = vsel %vm3331_vm1, %v55_v11, %v43_v16  ;;  %v63_v17 = vsel %vm3331_vm1, %v41_v63, %v45_v42 }
  0xc6   :  { %v81_v24 = vmul.f32 %v69_v61, %v66_v21  ;;  %v82_v25 = vmul.f32 %v70_v62, %v64_v0  ;;  %v77_v19 = vmul.f32 %v69_v61, %v65_v18  ;;  %v78_v26 = vmul.f32 %v70_v62, %v63_v17 }
  0xc7   :  { %v512_v18 = vperm.slane %v1869_v48, 2  ;;  %v562_v21 = vperm.slane %v1870_v56, 0  ;;  %v513_v17 = vperm.slane %v1869_v48, 3 }
  0xc8   :  { %356 = vmatpush.msra.mxu0 %v81_v24  ;;  %391 = vmatpush.msra.mxu1 %v82_v25 }
  0xc9   :  { %1859 = vmatmul.msk.f32.gmra.mxu2 %vm323_vm2, %v271_v4 }
  0xca   :  { %1864 = vmatmul.msk.f32.gmra.mxu3 %vm323_vm2, %v270_v59  ;;  %357 = vmatpush.msra.mxu0 %v77_v19 }
  0xcb   :  { %392 = vmatpush.msra.mxu1 %v78_v26  ;;  %1845 = vmatmul.msk.f32.vlgmr.msra.gmra.mxu0 %vm323_vm2, %v269_v44 }
  0xcc   :  { %1851 = vmatmul.msk.f32.vlgmr.msra.gmra.mxu1 %vm323_vm2, %v269_v44 }
  0xd1   :  { %1860 = vmatmul.msk.f32.gmra.mxu2 %vm323_vm2, %v272_v5 }
  0xd2   :  { %1865 = vmatmul.msk.f32.gmra.mxu3 %vm323_vm2, %v271_v4 }
  0xd3   :  { %1846 = vmatmul.msk.f32.gmra.mxu0 %vm323_vm2, %v270_v59 }
  0xd4   :  { %1852 = vmatmul.msk.f32.gmra.mxu1 %vm323_vm2, %v270_v59 }
  0xd9   :  { %1861 = vmatmul.msk.f32.gmra.mxu2 %vm323_vm2, %v273_v22 }
  0xda   :  { %1866 = vmatmul.msk.f32.gmra.mxu3 %vm323_vm2, %v272_v5 }
  0xdb   :  { %1847 = vmatmul.msk.f32.gmra.mxu0 %vm323_vm2, %v271_v4 }
  0xdc   :  { %1853 = vmatmul.msk.f32.gmra.mxu1 %vm323_vm2, %v271_v4 }
  0xe1   :  { %1862 = vmatmul.msk.f32.gmra.mxu2 %vm323_vm2, %v274_v23 }
  0xe2   :  { %1867 = vmatmul.msk.f32.gmra.mxu3 %vm323_vm2, %v273_v22 }
  0xe3   :  { %1848 = vmatmul.msk.f32.gmra.mxu0 %vm323_vm2, %v272_v5 }
  0xe4   :  { %1854 = vmatmul.msk.f32.gmra.mxu1 %vm323_vm2, %v272_v5 }
  0xea   :  { %1868 = vmatmul.msk.f32.gmra.mxu3 %vm323_vm2, %v274_v23 }
  0xeb   :  { %1849 = vmatmul.msk.f32.gmra.mxu0 %vm323_vm2, %v273_v22 }
  0xec   :  { %1855 = vmatmul.msk.f32.gmra.mxu1 %vm323_vm2, %v273_v22 }
  0xf3   :  { %1850 = vmatmul.msk.f32.gmra.mxu0 %vm323_vm2, %v274_v23 }
  0xf4   :  { %1856 = vmatmul.msk.f32.gmra.mxu1 %vm323_vm2, %v274_v23 }
 0x13c   :  { %v429_v27 = vpop.f32.mrf.mxu2 }
 0x144   :  { %v432_v29 = vpop.f32.mrf.mxu2 }
 0x145   :  { %v464_v28 = vpop.f32.mrf.mxu3 }
 0x148   :  { %v359_v10 = vpop.f32.mrf.mxu0 }
 0x149   :  { %v394_v30 = vpop.f32.mrf.mxu1  ;;  %482 = vrot.lane.b32.xlu2 %v359_v10, %s1981_s2 }
 0x14a   :  { %486 = vrot.lane.b32.xlu0 %v394_v30, %s1981_s2 }
 0x14c   :  { %v2337_v33 = vpop.f32.mrf.mxu2 }
 0x14d   :  { %v467_v3 = vpop.f32.mrf.mxu3 }
 0x14e   :  { %496 = vrot.lane.b32.xlu1 %v467_v3, %s1981_s2 }
 0x150   :  { %v362_v31 = vpop.f32.mrf.mxu0 }
 0x151   :  { %v397_v32 = vpop.f32.mrf.mxu1  ;;  %494 = vrot.lane.b32.xlu2 %v464_v28, %s1981_s2  ;;  %v565_v28 = vperm.slane %v1870_v56, 3 }
 0x152   :  { %490 = vrot.lane.b32.xlu0 %v429_v27, %s1981_s2 }
 0x154   :  { %v2349_v2 = vpop.f32.mrf.mxu2 }
 0x155   :  { %v2346_v36 = vpop.f32.mrf.mxu3 }
 0x156   :  { %492 = vrot.lane.b32.xlu1 %v432_v29, %s1981_s2  ;;  %v564_v29 = vperm.slane %v1870_v56, 2 }
 0x158   :  { %v2341_v34 = vpop.f32.mrf.mxu0 }
 0x159   :  { %v2343_v35 = vpop.f32.mrf.mxu1  ;;  %484 = vrot.lane.b32.xlu2 %v362_v31, %s1981_s2 }
 0x15a   :  { %488 = vrot.lane.b32.xlu0 %v397_v32, %s1981_s2 }
 0x15c   :  { %v441_v1 = vpop.f32.mrf.mxu2 }
 0x15d   :  { %v2355_v38 = vpop.f32.mrf.mxu3 }
 0x160   :  { %v2351_v7 = vpop.f32.mrf.mxu0 }
 0x161   :  { %v2353_v37 = vpop.f32.mrf.mxu1 }
 0x164   :  { %v444_v12 = vpop.f32.mrf.mxu2 }
 0x165   :  { %v476_v11 = vpop.f32.mrf.mxu3 }
 0x168   :  { %v371_v6 = vpop.f32.mrf.mxu0 }
 0x169   :  { %v406_v9 = vpop.f32.mrf.mxu1  ;;  %534 = vrot.lane.b32.xlu1 %v371_v6, %s1982_s20 }
 0x16a   :  { %538 = vrot.lane.b32.xlu2 %v406_v9, %s1982_s20 }
 0x16d   :  { %v479_v40 = vpop.f32.mrf.mxu3 }
 0x170   :  { %v374_v8 = vpop.f32.mrf.mxu0 }
 0x171   :  { %v409_v39 = vpop.f32.mrf.mxu1  ;;  %536 = vrot.lane.b32.xlu0 %v374_v8, %s1982_s20 }
 0x172   :  { %544 = vrot.lane.b32.xlu2 %v444_v12, %s1982_s20  ;;  %540 = vrot.lane.b32.xlu1 %v409_v39, %s1982_s20 }
 0x179   :  { %542 = vrot.lane.b32.xlu0 %v441_v1, %s1982_s20 }
 0x17a   :  { %546 = vrot.lane.b32.xlu2 %v476_v11, %s1982_s20  ;;  %548 = vrot.lane.b32.xlu1 %v479_v40, %s1982_s20 }
 0x1a3   :  { %v483_v14 = vpop.permute.xlu2 %482 }
 0x1ab   :  { %v495_v41 = vpop.permute.xlu2 %494 }
 0x1ac   :  { %v505_v52 = vsel %vm3330_vm3, %v495_v41, %v483_v14 }
 0x1ad   :  { %v518_v60 = vmul.f32 %v510_v50, %v505_v52 }
 0x1af   :  { %v526_v23 = vadd.f32 %v518_v60, %v2341_v34 }
 0x1b3   :  { %v485_v15 = vpop.permute.xlu2 %484 }
 0x1bc   :  { %v487_v13 = vpop.permute.xlu0 %486 }
 0x1bd   :  { %v503_v53 = vsel %vm3330_vm3, %v483_v14, %v487_v13 }
 0x1be   :  { %v519_v61 = vmul.f32 %v511_v51, %v503_v53 }
 0x1c0   :  { %v497_v42 = vpop.permute.xlu1 %496  ;;  %v527_v27 = vadd.f32 %v519_v61, %v2343_v35 }
 0x1c1   :  { %v506_v54 = vsel %vm3330_vm3, %v497_v42, %v485_v15 }
 0x1c2   :  { %v522_v16 = vmul.f32 %v510_v50, %v506_v54 }
 0x1c4   :  { %v491_v43 = vpop.permute.xlu0 %490  ;;  %v539_v45 = vpop.permute.xlu2 %538  ;;  %v530_v10 = vadd.f32 %v522_v16, %v2351_v7 }
 0x1c5   :  { %v499_v24 = vsel %vm3330_vm3, %v491_v43, %v495_v41  ;;  %v501_v25 = vsel %vm3330_vm3, %v487_v13, %v491_v43 }
 0x1c6   :  { %v520_v30 = vmul.f32 %v512_v18, %v501_v25  ;;  %v521_v1 = vmul.f32 %v513_v17, %v499_v24 }
 0x1c8   :  { %v493_v44 = vpop.permute.xlu1 %492  ;;  %v528_v43 = vadd.f32 %v520_v30, %v2337_v33  ;;  %v1983_v30 = vmov 0  }
 0x1c9   :  { %v500_v19 = vsel %vm3330_vm3, %v493_v44, %v497_v42  ;;  %1904 = vset.pattern.permute.xlu0 %v1983_v30  ;;  %1905 = vset.pattern.permute.xlu1 %v1983_v30 }
 0x1ca   :  { %v525_v6 = vmul.f32 %v513_v17, %v500_v19  ;;  %1906 = vset.pattern.permute.xlu2 %v1983_v30 }
 0x1cc   :  { %v489_v46 = vpop.permute.xlu0 %488  ;;  %v545_v49 = vpop.permute.xlu2 %544 }
 0x1cd   :  { %v504_v55 = vsel %vm3330_vm3, %v485_v15, %v489_v46  ;;  %v502_v4 = vsel %vm3330_vm3, %v489_v46, %v493_v44 }
 0x1ce   :  { %v523_v0 = vmul.f32 %v511_v51, %v504_v55  ;;  %v524_v3 = vmul.f32 %v512_v18, %v502_v4  ;;  %v529_v51 = vadd.f32 %v521_v1, %v2346_v36 }
 0x1d0   :  { %v531_v31 = vadd.f32 %v523_v0, %v2353_v37  ;;  %v532_v13 = vadd.f32 %v524_v3, %v2349_v2 }
 0x1d4   :  { %v547_v32 = vpop.permute.xlu2 %546 }
 0x1db   :  { %v535_v47 = vpop.permute.xlu1 %534 }
 0x1dc   :  { %v555_v26 = vsel %vm3329_vm4, %v535_v47, %v539_v45  ;;  %v557_v9 = vsel %vm3329_vm4, %v547_v32, %v535_v47 }
 0x1dd   :  { %v570_v11 = vmul.f32 %v562_v21, %v555_v26  ;;  %v573_v44 = vmul.f32 %v565_v28, %v557_v9  ;;  %v671_v9 = vld [vmem:[%s3319_s5 + $0x8] sm:$0xff] }
 0x1df   :  { %v578_v46 = vadd.f32 %v570_v11, %v526_v23  ;;  %v581_v55 = vadd.f32 %v573_v44, %v529_v51  ;;  %v626_v44 = vld [vmem:[%s3320_s4] sm:$0xff] }
 0x1e3   :  { %v537_v57 = vpop.permute.xlu0 %536 }
 0x1e4   :  { %v541_v59 = vpop.permute.xlu1 %540 }
 0x1e5   :  { %v554_v62 = vsel %vm3329_vm4, %v541_v59, %v545_v49  ;;  %v556_v63 = vsel %vm3329_vm4, %v537_v57, %v541_v59 }
 0x1e6   :  { %v574_v5 = vmul.f32 %v562_v21, %v556_v63  ;;  %v575_v22 = vmul.f32 %v563_v58, %v554_v62 }
 0x1e8   :  { %v582_v8 = vadd.f32 %v574_v5, %v530_v10  ;;  %v583_v34 = vadd.f32 %v575_v22, %v531_v31 }
 0x1ea   :  { %v591_v50 = vadd.f32 %v583_v34, %v582_v8 }
 0x1eb   :  { %v543_v12 = vpop.permute.xlu0 %542 }
 0x1ec   :  { %v551_v35 = vsel %vm3329_vm4, %v543_v12, %v547_v32  ;;  %v553_v7 = vsel %vm3329_vm4, %v539_v45, %v543_v12  ;;  %v549_v39 = vpop.permute.xlu1 %548  ;;  %v533_v45 = vadd.f32 %v525_v6, %v2355_v38 }
 0x1ed   :  { %v571_v40 = vmul.f32 %v563_v58, %v553_v7  ;;  %v572_v14 = vmul.f32 %v564_v29, %v551_v35  ;;  %v552_v37 = vsel %vm3329_vm4, %v545_v49, %v549_v39  ;;  %v558_v41 = vsel %vm3329_vm4, %v549_v39, %v537_v57 }
 0x1ee   :  { %v576_v42 = vmul.f32 %v564_v29, %v552_v37  ;;  %v577_v15 = vmul.f32 %v565_v28, %v558_v41 }
 0x1ef   :  { %v579_v47 = vadd.f32 %v571_v40, %v527_v27  ;;  %v580_v52 = vadd.f32 %v572_v14, %v528_v43  ;;  %v627_v14 = vld [vmem:[%s3320_s4 + $0x8] sm:$0xff] }
 0x1f0   :  { %v584_v48 = vadd.f32 %v576_v42, %v532_v13  ;;  %v585_v53 = vadd.f32 %v577_v15, %v533_v45 }
 0x1f1   :  { %v586_v49 = vadd.f32 %v579_v47, %v578_v46 }
 0x1f2   :  { %v592_v54 = vadd.f32 %v591_v50, %v584_v48 }
 0x1f3   :  { %v587_v56 = vadd.f32 %v586_v49, %v580_v52 }
 0x1f4   :  { %v593_v2 = vadd.f32 %v592_v54, %v585_v53 }
 0x1f5   :  { %v588_v57 = vadd.f32 %v587_v56, %v581_v55 }
 0x1f6   :  { %594 = vadd.xlane.f32.xlu0 %v593_v2 }
 0x1f7   :  { %589 = vadd.xlane.f32.xlu1 %v588_v57 }
 0x269   :  { %v595_v33 = vpop.xlane.xlu0 %594 }
 0x26a   :  { %v597_v58 = vmul.f32 0.001953125, %v595_v33  ;;  %v590_v59 = vpop.xlane.xlu1 %589 }
 0x26b   :  { %v596_v60 = vmul.f32 0.001953125, %v590_v59 }
 0x26c   :  { %v2413_v61 = vsub.f32 %v582_v8, %v597_v58  ;;  %v2415_v38 = vsub.f32 %v583_v34, %v597_v58  ;;  %v2417_v62 = vsub.f32 %v584_v48, %v597_v58  ;;  %v2423_v16 = vsub.f32 %v585_v53, %v597_v58  ;;  %v670_v48 = vld [vmem:[%s3319_s5] sm:$0xff] }
 0x26d   :  { %v2419_v36 = vsub.f32 %v578_v46, %v596_v60  ;;  %v2421_v63 = vsub.f32 %v579_v47, %v596_v60  ;;  %v2437_v26 = vsub.f32 %v580_v52, %v596_v60  ;;  %v2439_v23 = vsub.f32 %v581_v55, %v596_v60 }
 0x26e   :  { %v610_v18 = vmul.f32 %v2413_v61, %v2413_v61  ;;  %v611_v0 = vmul.f32 %v2415_v38, %v2415_v38  ;;  %v612_v21 = vmul.f32 %v2417_v62, %v2417_v62  ;;  %v613_v4 = vmul.f32 %v2423_v16, %v2423_v16 }
 0x26f   :  { %v606_v24 = vmul.f32 %v2419_v36, %v2419_v36  ;;  %v607_v25 = vmul.f32 %v2421_v63, %v2421_v63  ;;  %v608_v27 = vmul.f32 %v2437_v26, %v2437_v26  ;;  %v609_v29 = vmul.f32 %v2439_v23, %v2439_v23 }
 0x270   :  { %v619_v17 = vadd.f32 %v611_v0, %v610_v18 }
 0x271   :  { %v614_v22 = vadd.f32 %v607_v25, %v606_v24 }
 0x272   :  { %v620_v19 = vadd.f32 %v619_v17, %v612_v21 }
 0x273   :  { %v615_v28 = vadd.f32 %v614_v22, %v608_v27 }
 0x274   :  { %v621_v5 = vadd.f32 %v620_v19, %v613_v4 }
 0x275   :  { %v616_v10 = vadd.f32 %v615_v28, %v609_v29 }
 0x276   :  { %622 = vadd.xlane.f32.xlu2 %v621_v5 }
 0x27e   :  { %617 = vadd.xlane.f32.xlu2 %v616_v10 }
 0x296   :  { %679 = vperm.xlu2 %1906, %v671_v9  }
 0x2e9   :  { %v623_v3 = vpop.xlane.xlu2 %622 }
 0x2ea   :  { %v625_v31 = vmul.f32 0.001953125, %v623_v3 }
 0x2ec   :  { %v629_v32 = vadd.f32 1e-05, %v625_v31 }
 0x2ee   :  { %1907 = vrsqrt.f32 %v629_v32  ;;  %vm646_vm6 = vweird.f32 %v629_v32 }
 0x2f1   :  { %v618_v1 = vpop.xlane.xlu2 %617 }
 0x2f2   :  { %v624_v6 = vmul.f32 0.001953125, %v618_v1 }
 0x2f4   :  { %v1908_v11 = vpop.eup %1907  ;;  %v628_v12 = vadd.f32 1e-05, %v624_v6 }
 0x2f5   :  { %v641_v8 = vmul.f32 %v1908_v11, %v629_v32  ;;  %vm647_vm5 = vweird.f32 %v1908_v11 }
 0x2f6   :  { %1909 = vrsqrt.f32 %v628_v12  ;;  %vm648_vm7 = vmor %vm646_vm6, %vm647_vm5  ;;  %vm636_vm9 = vweird.f32 %v628_v12 }
 0x2f7   :  { %v642_v34 = vmul.f32 %v1908_v11, %v641_v8 }
 0x2f9   :  { %v643_v35 = vmul.f32 0.5, %v642_v34  ;;  %v680_v51 = vpop.permute.xlu2 %679 }
 0x2fb   :  { %v644_v7 = vsub.f32 1.5, %v643_v35 }
 0x2fc   :  { %v1910_v39 = vpop.eup %1909 }
 0x2fd   :  { %v631_v40 = vmul.f32 %v1910_v39, %v628_v12  ;;  %v645_v37 = vmul.f32 %v1908_v11, %v644_v7  ;;  %vm637_vm8 = vweird.f32 %v1910_v39 }
 0x2fe   :  { %vm638_vm10 = vmor %vm636_vm9, %vm637_vm8 }
 0x2ff   :  { %v632_v41 = vmul.f32 %v1910_v39, %v631_v40  ;;  %v649_v13 = vsel %vm648_vm7, %v1908_v11, %v645_v37 }
 0x300   :  { %v651_v42 = vmul.f32 %v649_v13, %v627_v14 }
 0x301   :  { %v633_v15 = vmul.f32 0.5, %v632_v41 }
 0x302   :  { %659 = vperm.xlu0 %1904, %v651_v42  }
 0x303   :  { %v634_v43 = vsub.f32 1.5, %v633_v15 }
 0x305   :  { %v635_v46 = vmul.f32 %v1910_v39, %v634_v43 }
 0x307   :  { %v639_v47 = vsel %vm638_vm10, %v1910_v39, %v635_v46 }
 0x308   :  { %v650_v45 = vmul.f32 %v639_v47, %v626_v44 }
 0x30a   :  { %654 = vperm.xlu1 %1905, %v650_v45  }
 0x312   :  { %674 = vperm.xlu1 %1905, %v670_v48  }
 0x374   :  { %v660_v50 = vpop.permute.xlu0 %659 }
 0x375   :  { %v666_v52 = vmul.f32 %v660_v50, %v2413_v61  ;;  %v667_v49 = vmul.f32 %v660_v50, %v2415_v38  ;;  %v668_v53 = vmul.f32 %v660_v50, %v2417_v62  ;;  %v669_v54 = vmul.f32 %v660_v50, %v2423_v16 }
 0x377   :  { %v2461_v55 = vadd.f32 %v680_v51, %v666_v52  ;;  %v2463_v56 = vadd.f32 %v680_v51, %v667_v49  ;;  %v2465_v2 = vadd.f32 %v680_v51, %v668_v53  ;;  %v2467_v57 = vadd.f32 %v680_v51, %v669_v54 }
 0x379   :  { %v2470_v33 = vmul.f32 0.70710677, %v2461_v55  ;;  %v2473_v58 = vmul.f32 0.70710677, %v2463_v56  ;;  %v2476_v59 = vmul.f32 0.70710677, %v2465_v2 }
 0x37a   :  { %v2479_v60 = vmul.f32 0.70710677, %v2467_v57 }
 0x37b   :  { %v2482_v61 = vand.u32 2147483647, %v2470_v33  ;;  %v2485_v38 = vand.u32 2147483647, %v2473_v58  ;;  %v728_v62 = vand.u32 2147483647, %v2476_v59 }
 0x37c   :  { %v729_v16 = vand.u32 2147483647, %v2479_v60  ;;  %v655_v18 = vpop.permute.xlu1 %654 }
 0x37d   :  { %v734_v0 = vmul.f32 0.3275911, %v2482_v61  ;;  %v735_v21 = vmul.f32 0.3275911, %v2485_v38  ;;  %v736_v17 = vmul.f32 0.3275911, %v728_v62  ;;  %v662_v28 = vmul.f32 %v655_v18, %v2419_v36 }
 0x37e   :  { %v737_v24 = vmul.f32 0.3275911, %v729_v16  ;;  %v944_v4 = vsub.f32 0.0, %v728_v62  ;;  %v945_v22 = vsub.f32 0.0, %v729_v16  ;;  %v663_v29 = vmul.f32 %v655_v18, %v2421_v63 }
 0x37f   :  { %v2491_v25 = vadd.f32 1.0, %v734_v0  ;;  %v2493_v19 = vadd.f32 1.0, %v735_v21  ;;  %v2495_v5 = vadd.f32 1.0, %v736_v17  ;;  %v664_v10 = vmul.f32 %v655_v18, %v2437_v26 }
 0x380   :  { %v2497_v27 = vadd.f32 1.0, %v737_v24  ;;  %v952_v30 = vmul.f32 %v944_v4, %v728_v62  ;;  %v665_v3 = vmul.f32 %v655_v18, %v2439_v23  ;;  %v953_v36 = vmul.f32 %v945_v22, %v729_v16 }
 0x381   :  { %1911 = vrcp.f32 %v2491_v25 }
 0x382   :  { %1913 = vrcp.f32 %v2493_v19  ;;  %v966_v11 = vmul.f32 1.442695, %v952_v30  ;;  %v968_v14 = vmul.f32 1.442695, %v953_v36  ;;  %v862_v54 = vand.u32 2147483648, %v2497_v27 }
 0x383   :  { %1915 = vrcp.f32 %v2495_v5  ;;  %v860_v21 = vand.u32 2147483647, %v2497_v27  ;;  %vm856_vm5 = vweird.f32 %v2497_v27 }
 0x384   :  { %v675_v31 = vpop.permute.xlu1 %674  ;;  %1917 = vrcp.f32 %v2497_v27 }
 0x385   :  { %v2505_v32 = vadd.f32 %v675_v31, %v662_v28  ;;  %v2507_v1 = vadd.f32 %v675_v31, %v663_v29  ;;  %v2509_v6 = vadd.f32 %v675_v31, %v664_v10  ;;  %v2512_v63 = vadd.f32 %v675_v31, %v665_v3 }
 0x386   :  { %1919 = vpow2.f32 %v966_v11  ;;  %v2570_v10 = vor.u32 1.1754944e-38, %v862_v54  ;;  %vm2613_vm9 = vcmp.eq.f32.partialorder %v860_v21, 8.507059e+37 }
 0x387   :  { %v2516_v26 = vmul.f32 0.70710677, %v2505_v32  ;;  %v2519_v23 = vmul.f32 0.70710677, %v2507_v1  ;;  %v2522_v9 = vmul.f32 0.70710677, %v2509_v6  ;;  %v2528_v7 = vpop.eup %1911 }
 0x388   :  { %v701_v12 = vmul.f32 0.70710677, %v2512_v63  ;;  %v2530_v40 = vpop.eup %1913  ;;  %v2546_v49 = vmul.f32 %v2528_v7, %v2491_v25 }
 0x389   :  { %v722_v8 = vand.u32 2147483647, %v2516_v26  ;;  %v723_v34 = vand.u32 2147483647, %v2519_v23  ;;  %v724_v35 = vand.u32 2147483647, %v2522_v9  ;;  %v2532_v13 = vpop.eup %1915  ;;  %v2552_v62 = vmul.f32 %v2530_v40, %v2493_v19 }
 0x38a   :  { %v725_v39 = vand.u32 2147483647, %v701_v12  ;;  %v2534_v44 = vpop.eup %1917  ;;  %v2556_v16 = vmul.f32 %v2532_v13, %v2495_v5  ;;  %vm709_vm11 = vcmp.lt.f32.partialorder %v701_v12, 0.0 }
 0x38b   :  { %v730_v37 = vmul.f32 0.3275911, %v722_v8  ;;  %v731_v41 = vmul.f32 0.3275911, %v723_v34  ;;  %v732_v42 = vmul.f32 0.3275911, %v724_v35  ;;  %v2560_v18 = vmul.f32 %v2534_v44, %v2497_v27 }
 0x38c   :  { %v733_v15 = vmul.f32 0.3275911, %v725_v39  ;;  %v938_v43 = vsub.f32 0.0, %v722_v8  ;;  %v939_v45 = vsub.f32 0.0, %v723_v34  ;;  %v940_v51 = vsub.f32 0.0, %v724_v35  ;;  %v2567_v22 = vpop.eup %1919 }
 0x38d   :  { %v2536_v46 = vadd.f32 1.0, %v730_v37  ;;  %v2538_v47 = vadd.f32 1.0, %v731_v41  ;;  %v2540_v48 = vadd.f32 1.0, %v732_v42  ;;  %v941_v52 = vsub.f32 0.0, %v725_v39 }
 0x38e   :  { %v2542_v50 = vadd.f32 1.0, %v733_v15  ;;  %v946_v53 = vmul.f32 %v938_v43, %v722_v8  ;;  %v947_v17 = vmul.f32 %v939_v45, %v723_v34  ;;  %v948_v24 = vmul.f32 %v940_v51, %v724_v35 }
 0x38f   :  { %1921 = vrcp.f32 %v2536_v46  ;;  %v949_v4 = vmul.f32 %v941_v52, %v725_v39  ;;  %v853_v36 = vsub.f32 1.0, %v2560_v18  ;;  %v3325_v8 = vmov 1.0  }
 0x390   :  { %1923 = vrcp.f32 %v2538_v47  ;;  %v954_v28 = vmul.f32 1.442695, %v946_v53  ;;  %v802_v29 = vand.u32 2147483648, %v2542_v50  ;;  %v2578_v34 = vsel %vm709_vm11, -1.0, %v3325_v8 }
 0x391   :  { %1925 = vrcp.f32 %v2540_v48  ;;  %v800_v35 = vand.u32 2147483647, %v2542_v50  ;;  %v785_v39 = vand.u32 2147483647, %v2540_v48  ;;  %v2586_v42 = vmul.f32 1.442695, %v947_v17 }
 0x392   :  { %1927 = vrcp.f32 %v2542_v50  ;;  %v2588_v15 = vmul.f32 1.442695, %v948_v24  ;;  %v2590_v43 = vmul.f32 1.442695, %v949_v4  ;;  %vm796_vm12 = vweird.f32 %v2542_v50 }
 0x393   :  { %1929 = vpow2.f32 %v968_v14  ;;  %v787_v14 = vand.u32 2147483648, %v2540_v48  ;;  %v803_v51 = vor.u32 1.1754944e-38, %v802_v29  ;;  %vm781_vm13 = vweird.f32 %v2540_v48 }
 0x394   :  { %1931 = vpow2.f32 %v954_v28  ;;  %vm2597_vm14 = vcmp.eq.f32.partialorder %v785_v39, 8.507059e+37  ;;  %vm751_vm15 = vweird.f32 %v2536_v46  ;;  %vm2605_vm2 = vcmp.eq.f32.partialorder %v800_v35, 8.507059e+37 }
 0x395   :  { %v1922_v11 = vpop.eup %1921  ;;  %v788_v29 = vor.u32 1.1754944e-38, %v787_v14  ;;  %v757_v0 = vand.u32 2147483648, %v2536_v46  ;;  %vm708_vm11 = vcmp.lt.f32.partialorder %v2522_v9, 0.0  ;;  %vm766_vm3 = vweird.f32 %v2538_v47 }
 0x396   :  { %v2583_v37 = vpop.eup %1923  ;;  %v747_v41 = vmul.f32 %v1922_v11, %v2536_v46  ;;  %vm752_vm6 = vweird.f32 %v1922_v11  ;;  %1933 = vpow2.f32 %v2586_v42 }
 0x397   :  { %v1926_v45 = vpop.eup %1925  ;;  %v762_v12 = vmul.f32 %v2583_v37, %v2538_v47  ;;  %vm753_vm4 = vmor %vm751_vm15, %vm752_vm6  ;;  %vm767_vm1 = vweird.f32 %v2583_v37  ;;  %1935 = vpow2.f32 %v2588_v15  ;;  %vm827_vm6 = vweird.f32 %v2530_v40 }
 0x398   :  { %v1928_v52 = vpop.eup %1927  ;;  %v748_v53 = vsub.f32 1.0, %v747_v41  ;;  %v777_v54 = vmul.f32 %v1926_v45, %v2540_v48  ;;  %v755_v41 = vand.u32 2147483647, %v2536_v46  ;;  %vm782_vm8 = vweird.f32 %v1926_v45  ;;  %vm2629_vm0 = vmor %vm766_vm3, %vm767_vm1 }
 0x399   :  { %v2602_v17 = vpop.eup %1929  ;;  %v763_v24 = vsub.f32 1.0, %v762_v12  ;;  %v792_v4 = vmul.f32 %v1928_v52, %v2542_v50  ;;  %vm797_vm7 = vweird.f32 %v1928_v52  ;;  %vm783_vm15 = vmor %vm781_vm13, %vm782_vm8  ;;  %vm842_vm13 = vweird.f32 %v2532_v13 }
 0x39a   :  { %v778_v39 = vsub.f32 1.0, %v777_v54  ;;  %v749_v30 = vmul.f32 %v1922_v11, %v748_v53  ;;  %vm2617_vm10 = vcmp.eq.f32.partialorder %v755_v41, 8.507059e+37  ;;  %v758_v54 = vor.u32 1.1754944e-38, %v757_v0  ;;  %v2621_v53 = vpop.eup %1931  ;;  %vm798_vm1 = vmor %vm796_vm12, %vm797_vm7 }
 0x39b   :  { %v793_v3 = vsub.f32 1.0, %v792_v4  ;;  %v764_v12 = vmul.f32 %v2583_v37, %v763_v24  ;;  %v770_v0 = vand.u32 2147483647, %v2538_v47  ;;  %vm841_vm12 = vweird.f32 %v2495_v5 }
 0x39c   :  { %v779_v8 = vmul.f32 %v1926_v45, %v778_v39  ;;  %v750_v14 = vadd.f32 %v1922_v11, %v749_v30  ;;  %1937 = vpow2.f32 %v2590_v43  ;;  %vm826_vm7 = vweird.f32 %v2493_v19 }
 0x39d   :  { %v794_v20 = vmul.f32 %v1928_v52, %v793_v3  ;;  %v765_v21 = vadd.f32 %v2583_v37, %v764_v12  ;;  %v772_v3 = vand.u32 2147483648, %v2538_v47  ;;  %vm771_vm3 = vcmp.eq.f32.partialorder %v770_v0, 8.507059e+37  ;;  %vm2731_vm8 = vmor %vm826_vm7, %vm827_vm6 }
 0x39e   :  { %v780_v30 = vadd.f32 %v1926_v45, %v779_v8  ;;  %v754_v24 = vsel %vm753_vm4, %v1922_v11, %v750_v14  ;;  %v854_v8 = vmul.f32 %v2534_v44, %v853_v36  ;;  %v845_v0 = vand.u32 2147483647, %v2495_v5 }
 0x39f   :  { %v795_v41 = vadd.f32 %v1928_v52, %v794_v20  ;;  %v2640_v46 = vsel %vm2617_vm10, %v758_v54, %v754_v24  ;;  %v769_v11 = vsel %vm2629_vm0, %v2583_v37, %v765_v21  ;;  %v773_v48 = vor.u32 1.1754944e-38, %v772_v3 }
 0x3a0   :  { %v784_v47 = vsel %vm783_vm15, %v1926_v45, %v780_v30  ;;  %v866_v20 = vmul.f32 1.0614054, %v2640_v46  ;;  %v855_v12 = vadd.f32 %v2534_v44, %v854_v8  ;;  %vm857_vm0 = vweird.f32 %v2534_v44 }
 0x3a1   :  { %v799_v39 = vsel %vm798_vm1, %v1928_v52, %v795_v41  ;;  %v2652_v31 = vsel %vm2597_vm14, %v788_v29, %v784_v47  ;;  %v2661_v45 = vsel %vm771_vm3, %v773_v48, %v769_v11  ;;  %vm858_vm4 = vmor %vm856_vm5, %vm857_vm0  ;;  %v3344_v54 = vsub.f32 1.0, %v2556_v16  ;;  %v1934_v48 = vpop.eup %1933 }
 0x3a2   :  { %v2658_v36 = vsel %vm2605_vm2, %v803_v51, %v799_v39  ;;  %v868_v50 = vmul.f32 1.0614054, %v2652_v31  ;;  %v874_v37 = vadd.f32 -1.4531521, %v866_v20  ;;  %v867_v18 = vmul.f32 1.0614054, %v2661_v45  ;;  %vm2692_vm14 = vmor %vm841_vm12, %vm842_vm13 }
 0x3a3   :  { %v869_v52 = vmul.f32 1.0614054, %v2658_v36  ;;  %v859_v29 = vsel %vm858_vm4, %v2534_v44, %v855_v12  ;;  %v839_v27 = vmul.f32 %v2532_v13, %v3344_v54  ;;  %v3345_v3 = vmov 1.0  }
 0x3a4   :  { %v876_v14 = vadd.f32 -1.4531521, %v868_v50  ;;  %v882_v51 = vmul.f32 %v874_v37, %v2640_v46  ;;  %v2673_v28 = vsel %vm2613_vm9, %v2570_v10, %v859_v29  ;;  %v875_v42 = vadd.f32 -1.4531521, %v867_v18 }
 0x3a5   :  { %v877_v21 = vadd.f32 -1.4531521, %v869_v52  ;;  %v873_v30 = vmul.f32 1.0614054, %v2673_v28  ;;  %v840_v4 = vadd.f32 %v2532_v13, %v839_v27  ;;  %v2689_v41 = vsel %vm708_vm11, -1.0, %v3345_v3 }
 0x3a6   :  { %v884_v44 = vmul.f32 %v876_v14, %v2652_v31  ;;  %v890_v24 = vadd.f32 1.4214138, %v882_v51  ;;  %v883_v35 = vmul.f32 %v875_v42, %v2661_v45  ;;  %v847_v20 = vand.u32 2147483648, %v2495_v5 }
 0x3a7   :  { %v885_v10 = vmul.f32 %v877_v21, %v2658_v36  ;;  %v881_v16 = vadd.f32 -1.4531521, %v873_v30  ;;  %v844_v9 = vsel %vm2692_vm14, %v2532_v13, %v840_v4  ;;  %vm846_vm2 = vcmp.eq.f32.partialorder %v845_v0, 8.507059e+37  ;;  %v1936_v0 = vpop.eup %1935 }
 0x3a8   :  { %v892_v11 = vadd.f32 1.4214138, %v884_v44  ;;  %v898_v8 = vmul.f32 %v890_v24, %v2640_v46  ;;  %v891_v12 = vadd.f32 1.4214138, %v883_v35  ;;  %v848_v18 = vor.u32 1.1754944e-38, %v847_v20 }
 0x3a9   :  { %v893_v39 = vadd.f32 1.4214138, %v885_v10  ;;  %v889_v50 = vmul.f32 %v881_v16, %v2673_v28  ;;  %vm706_vm5 = vcmp.lt.f32.partialorder %v2516_v26, 0.0  ;;  %v3348_v24 = vsub.f32 1.0, %v2552_v62 }
 0x3aa   :  { %v900_v37 = vmul.f32 %v892_v11, %v2652_v31  ;;  %v906_v52 = vadd.f32 -0.28449672, %v898_v8  ;;  %v899_v14 = vmul.f32 %v891_v12, %v2661_v45  ;;  %v2707_v27 = vsel %vm846_vm2, %v848_v18, %v844_v9 }
 0x3ab   :  { %v901_v29 = vmul.f32 %v893_v39, %v2658_v36  ;;  %v897_v5 = vadd.f32 1.4214138, %v889_v50  ;;  %v872_v42 = vmul.f32 1.0614054, %v2707_v27  ;;  %v824_v43 = vmul.f32 %v2530_v40, %v3348_v24  ;;  %v1938_v50 = vpop.eup %1937 }
 0x3ac   :  { %v908_v51 = vadd.f32 -0.28449672, %v900_v37  ;;  %v914_v54 = vmul.f32 %v906_v52, %v2640_v46  ;;  %v907_v21 = vadd.f32 -0.28449672, %v899_v14  ;;  %v714_v37 = vsel %vm706_vm5, -1.0, %v3345_v3 }
 0x3ad   :  { %v909_v13 = vadd.f32 -0.28449672, %v901_v29  ;;  %v905_v15 = vmul.f32 %v897_v5, %v2673_v28  ;;  %v880_v16 = vadd.f32 -1.4531521, %v872_v42  ;;  %v825_v47 = vadd.f32 %v2530_v40, %v824_v43 }
 0x3ae   :  { %v916_v30 = vmul.f32 %v908_v51, %v2652_v31  ;;  %v922_v44 = vadd.f32 0.2548296, %v914_v54  ;;  %v915_v10 = vmul.f32 %v907_v21, %v2661_v45  ;;  %v830_v5 = vand.u32 2147483647, %v2493_v19 }
 0x3af   :  { %v917_v4 = vmul.f32 %v909_v13, %v2658_v36  ;;  %v913_v35 = vadd.f32 -0.28449672, %v905_v15  ;;  %v888_v12 = vmul.f32 %v880_v16, %v2707_v27  ;;  %v829_v26 = vsel %vm2731_vm8, %v2530_v40, %v825_v47 }
 0x3b0   :  { %v924_v11 = vadd.f32 0.2548296, %v916_v30  ;;  %v930_v8 = vmul.f32 %v922_v44, %v2640_v46  ;;  %v923_v39 = vadd.f32 0.2548296, %v915_v10  ;;  %v690_v15 = vmul.f32 0.5, %v2505_v32 }
 0x3b1   :  { %v925_v20 = vadd.f32 0.2548296, %v917_v4  ;;  %v921_v62 = vmul.f32 %v913_v35, %v2673_v28  ;;  %v896_v29 = vadd.f32 1.4214138, %v888_v12  ;;  %vm707_vm9 = vcmp.lt.f32.partialorder %v2519_v23, 0.0 }
 0x3b2   :  { %v932_v9 = vmul.f32 %v924_v11, %v2652_v31  ;;  %v970_v52 = vmul.f32 %v2621_v53, %v930_v8  ;;  %v931_v18 = vmul.f32 %v923_v39, %v2661_v45  ;;  %v832_v53 = vand.u32 2147483648, %v2493_v19 }
 0x3b3   :  { %v933_v46 = vmul.f32 %v925_v20, %v2658_v36  ;;  %v929_v36 = vadd.f32 0.2548296, %v921_v62  ;;  %v904_v45 = vmul.f32 %v896_v29, %v2707_v27  ;;  %vm831_vm10 = vcmp.eq.f32.partialorder %v830_v5, 8.507059e+37 }
 0x3b4   :  { %v972_v31 = vmul.f32 %v1936_v0, %v932_v9  ;;  %v978_v51 = vsub.f32 1.0, %v970_v52  ;;  %v971_v13 = vmul.f32 %v1934_v48, %v931_v18  ;;  %v833_v30 = vor.u32 1.1754944e-38, %v832_v53 }
 0x3b5   :  { %v973_v54 = vmul.f32 %v1938_v50, %v933_v46  ;;  %v912_v24 = vadd.f32 -0.28449672, %v904_v45  ;;  %v3351_v48 = vsub.f32 0.0, %v2485_v38  ;;  %v937_v32 = vmul.f32 %v929_v36, %v2673_v28 }
 0x3b6   :  { %v980_v21 = vsub.f32 1.0, %v972_v31  ;;  %v986_v42 = vmul.f32 %v978_v51, %v714_v37  ;;  %v979_v4 = vsub.f32 1.0, %v971_v13  ;;  %v2744_v19 = vsel %vm831_vm10, %v833_v30, %v829_v26 }
 0x3b7   :  { %v981_v44 = vsub.f32 1.0, %v973_v54  ;;  %v951_v10 = vmul.f32 %v3351_v48, %v2485_v38  ;;  %v920_v16 = vmul.f32 %v912_v24, %v2707_v27  ;;  %v692_v0 = vmul.f32 0.5, %v2509_v6 }
 0x3b8   :  { %v988_v43 = vmul.f32 %v980_v21, %v2689_v41  ;;  %v994_v40 = vadd.f32 1.0, %v986_v42  ;;  %v871_v41 = vmul.f32 1.0614054, %v2744_v19  ;;  %v693_v47 = vmul.f32 0.5, %v2512_v63 }
 0x3b9   :  { %v989_v35 = vmul.f32 %v981_v44, %v2578_v34  ;;  %v715_v38 = vsel %vm707_vm9, -1.0, %v3345_v3  ;;  %v928_v39 = vadd.f32 0.2548296, %v920_v16  ;;  %v3352_v62 = vsub.f32 1.0, %v2546_v49 }
 0x3ba   :  { %v996_v11 = vadd.f32 1.0, %v988_v43  ;;  %v2753_v8 = vmul.f32 %v994_v40, %v690_v15  ;;  %v987_v28 = vmul.f32 %v979_v4, %v715_v38  ;;  %v879_v6 = vadd.f32 -1.4531521, %v871_v41 }
 0x3bb   :  { %v997_v20 = vadd.f32 1.0, %v989_v35  ;;  %v809_v12 = vmul.f32 %v2528_v7, %v3352_v62  ;;  %v977_v63 = vmul.f32 %v2602_v17, %v937_v32  ;;  %v936_v9 = vmul.f32 %v928_v39, %v2707_v27 }
 0x3bc   :  { %v2760_v34 = vmul.f32 %v996_v11, %v692_v0  ;;  %1068 = vrot.lane.b32.xlu2 %v2753_v8, %s1979_s15  ;;  %vm811_vm11 = vweird.f32 %v2491_v25  ;;  %v887_v23 = vmul.f32 %v879_v6, %v2744_v19  ;;  %vm812_vm15 = vweird.f32 %v2528_v7 }
 0x3bd   :  { %v2767_v50 = vmul.f32 %v997_v20, %v693_v47  ;;  %v810_v37 = vadd.f32 %v2528_v7, %v809_v12  ;;  %v815_v49 = vand.u32 2147483647, %v2491_v25  ;;  %vm712_vm1 = vcmp.lt.f32.partialorder %v2476_v59, 0.0  ;;  %vm2782_vm3 = vmor %vm811_vm11, %vm812_vm15 }
 0x3be   :  { %1076 = vrot.lane.b32.xlu0 %v2760_v34, %s1979_s15  ;;  %v976_v17 = vmul.f32 %v2567_v22, %v936_v9  ;;  %v817_v52 = vand.u32 2147483648, %v2491_v25  ;;  %v995_v46 = vadd.f32 1.0, %v987_v28  ;;  %vm713_vm0 = vcmp.lt.f32.partialorder %v2479_v60, 0.0 }
 0x3bf   :  { %1080 = vrot.lane.b32.xlu1 %v2767_v50, %s1979_s15  ;;  %v895_v18 = vadd.f32 1.4214138, %v887_v23  ;;  %v814_v29 = vsel %vm2782_vm3, %v2528_v7, %v810_v37  ;;  %v964_v14 = vmul.f32 1.442695, %v951_v10  ;;  %v985_v5 = vsub.f32 1.0, %v977_v63 }
 0x3c0   :  { %v984_v31 = vsub.f32 1.0, %v976_v17  ;;  %v818_v59 = vor.u32 1.1754944e-38, %v817_v52  ;;  %v691_v22 = vmul.f32 0.5, %v2507_v1  ;;  %v720_v51 = vsel %vm712_vm1, -1.0, %v3345_v3 }
 0x3c1   :  { %v903_v26 = vmul.f32 %v895_v18, %v2744_v19  ;;  %vm816_vm4 = vcmp.eq.f32.partialorder %v815_v49, 8.507059e+37  ;;  %v942_v25 = vsub.f32 0.0, %v2482_v61  ;;  %v721_v7 = vsel %vm713_vm0, -1.0, %v3345_v3  ;;  %v1871_v18 = vld [vmem:[%s3317_s8 + $0x1] ss:$4 sm:$0xf] }
 0x3c2   :  { %v992_v53 = vmul.f32 %v984_v31, %v720_v51  ;;  %v819_v54 = vsel %vm816_vm4, %v818_v59, %v814_v29  ;;  %v2795_v13 = vmul.f32 %v995_v46, %v691_v22  ;;  %1939 = vpow2.f32 %v964_v14  ;;  %v3355_v31 = vld [vmem:[#allocation4_spill] sm:$0xff] }
 0x3c3   :  { %v911_v36 = vadd.f32 -0.28449672, %v903_v26  ;;  %v870_v1 = vmul.f32 1.0614054, %v819_v54  ;;  %v993_v45 = vmul.f32 %v985_v5, %v721_v7  ;;  %v950_v30 = vmul.f32 %v942_v25, %v2482_v61 }
 0x3c4   :  { %1018 = vrot.lane.b32.xlu2 %v2760_v34, %s1980_s21  ;;  %v1000_v21 = vadd.f32 1.0, %v992_v53  ;;  %v696_v44 = vmul.f32 0.5, %v2465_v2  ;;  %v697_v32 = vmul.f32 0.5, %v2467_v57  ;;  %vm711_vm12 = vcmp.lt.f32.partialorder %v2473_v58, 0.0 }
 0x3c5   :  { %v919_v15 = vmul.f32 %v911_v36, %v2744_v19  ;;  %v878_v42 = vadd.f32 -1.4531521, %v870_v1  ;;  %v1001_v43 = vadd.f32 1.0, %v993_v45  ;;  %v962_v35 = vmul.f32 1.442695, %v950_v30 }
 0x3c6   :  { %1072 = vrot.lane.b32.xlu0 %v2795_v13, %s1979_s15  ;;  %v2809_v40 = vmul.f32 %v1000_v21, %v696_v44  ;;  %v695_v57 = vmul.f32 0.5, %v2463_v56  ;;  %vm710_vm13 = vcmp.lt.f32.partialorder %v2470_v33, 0.0  ;;  %v694_v56 = vmul.f32 0.5, %v2461_v55  ;;  %v2863_v1 = vld [vmem:[%s3317_s8] ss:$4 sm:$0xf] }
 0x3c7   :  { %1014 = vrot.lane.b32.xlu1 %v2795_v13, %s1980_s21  ;;  %v927_v60 = vadd.f32 0.2548296, %v919_v15  ;;  %v886_v24 = vmul.f32 %v878_v42, %v819_v54  ;;  %v2816_v2 = vmul.f32 %v1001_v43, %v697_v32  ;;  %1941 = vpow2.f32 %v962_v35 }
 0x3c8   :  { %v1940_v10 = vpop.eup %1939  ;;  %v718_v12 = vsel %vm710_vm13, -1.0, %v3345_v3  ;;  %v1096_v14 = vperm.slane %v1871_v18, 2  ;;  %v1097_v5 = vperm.slane %v1871_v18, 3  ;;  %vm3356_vm14 = vcmp.lt.s32.totalorder %v3355_v31, 112 }
 0x3c9   :  { %v935_v4 = vmul.f32 %v927_v60, %v2744_v19  ;;  %v894_v48 = vadd.f32 1.4214138, %v886_v24  ;;  %v719_v19 = vsel %vm711_vm12, -1.0, %v3345_v3  ;;  %vm3357_vm2 = vmmov %vm3356_vm14  ;;  %v1094_v15 = vperm.slane %v1871_v18, 0 }
 0x3ca   :  { %vm3358_vm5 = vmmov %vm3357_vm2  ;;  %v1095_v42 = vperm.slane %v1871_v18, 1  ;;  %v1038_v43 = vperm.slane %v2863_v1, 2  ;;  %vm3364_vm11 = vcmp.lt.s32.totalorder %v3355_v31, 16  ;;  %vm1148_vm3 = vcmask 392192  }
 0x3cb   :  { %v975_v61 = vmul.f32 %v1940_v10, %v935_v4  ;;  %v902_v16 = vmul.f32 %v894_v48, %v819_v54  ;;  %vm3359_vm6 = vmmov %vm3357_vm2 }
 0x3cc   :  { %1078 = vrot.lane.b32.xlu2 %v2809_v40, %s1979_s15  ;;  %vm3360_vm7 = vmmov %vm3357_vm2 }
 0x3cd   :  { %v983_v0 = vsub.f32 1.0, %v975_v61  ;;  %v910_v11 = vadd.f32 -0.28449672, %v902_v16  ;;  %v1942_v28 = vpop.eup %1941  ;;  %vm3361_vm8 = vmmov %vm3357_vm2 }
 0x3ce   :  { %vm3362_vm9 = vmmov %vm3357_vm2 }
 0x3cf   :  { %1082 = vrot.lane.b32.xlu1 %v2816_v2, %s1979_s15  ;;  %v991_v41 = vmul.f32 %v983_v0, %v719_v19  ;;  %v918_v47 = vmul.f32 %v910_v11, %v819_v54  ;;  %vm3363_vm10 = vmmov %vm3357_vm2  ;;  %v1036_v19 = vperm.slane %v2863_v1, 0 }
 0x3d0   :  { %vm3365_vm15 = vmmov %vm3364_vm11 }
 0x3d1   :  { %v999_v20 = vadd.f32 1.0, %v991_v41  ;;  %v926_v38 = vadd.f32 0.2548296, %v918_v47  ;;  %vm3366_vm1 = vmmov %vm3364_vm11 }
 0x3d2   :  { %vm3367_vm0 = vmmov %vm3366_vm1 }
 0x3d3   :  { %v2822_v39 = vmul.f32 %v999_v20, %v695_v57  ;;  %v934_v58 = vmul.f32 %v926_v38, %v819_v54  ;;  %vm3368_vm4 = vmmov %vm3367_vm0 }
 0x3d4   :  { %vm3369_vm12 = vmmov %vm3367_vm0 }
 0x3d5   :  { %1074 = vrot.lane.b32.xlu0 %v2822_v39, %s1979_s15  ;;  %v974_v6 = vmul.f32 %v1942_v28, %v934_v58  ;;  %vm3370_vm13 = vmmov %vm3367_vm0 }
 0x3d7   :  { %1016 = vrot.lane.b32.xlu1 %v2822_v39, %s1980_s21  ;;  %v982_v62 = vsub.f32 1.0, %v974_v6 }
 0x3d9   :  { %v990_v63 = vmul.f32 %v982_v62, %v718_v12  ;;  %v1119_v62 = vld [vmem:[%s3321_s3 + $0x8] sm:$0xff] }
 0x3db   :  { %v998_v9 = vadd.f32 1.0, %v990_v63 }
 0x3dd   :  { %1024 = vrot.lane.b32.xlu0 %v2816_v2, %s1980_s21  ;;  %v2833_v23 = vmul.f32 %v998_v9, %v694_v56  ;;  %v1120_v9 = vld [vmem:[%s3321_s3 + $0x10] sm:$0xff] }
 0x3df   :  { %1022 = vrot.lane.b32.xlu1 %v2767_v50, %s1980_s21  ;;  %1070 = vrot.lane.b32.xlu2 %v2833_v23, %s1979_s15 }
 0x3e5   :  { %1010 = vrot.lane.b32.xlu0 %v2753_v8, %s1980_s21 }
 0x3e7   :  { %1020 = vrot.lane.b32.xlu2 %v2809_v40, %s1980_s21 }
 0x3ef   :  { %1012 = vrot.lane.b32.xlu2 %v2833_v23, %s1980_s21 }
 0x416   :  { %v1069_v55 = vpop.permute.xlu2 %1068 }
 0x41e   :  { %v2845_v33 = vpop.permute.xlu2 %1018 }
 0x426   :  { %v1079_v37 = vpop.permute.xlu2 %1078 }
 0x430   :  { %v1077_v17 = vpop.permute.xlu0 %1076 }
 0x431   :  { %v1081_v49 = vpop.permute.xlu1 %1080 }
 0x432   :  { %v1090_v59 = vsel %vm3356_vm14, %v1081_v49, %v1069_v55  ;;  %v1084_v22 = vsel %vm3357_vm2, %v1077_v17, %v1081_v49  ;;  %vm3371_vm14 = vmmov %vm3367_vm0  ;;  %vm3372_vm2 = vcmp.lt.s32.totalorder %v3355_v31, 1 }
 0x433   :  { %v1104_v7 = vmul.f32 %v1096_v14, %v1084_v22  ;;  %v1105_v36 = vmul.f32 %v1097_v5, %v1090_v59 }
 0x438   :  { %v1073_v46 = vpop.permute.xlu0 %1072 }
 0x439   :  { %v2847_v27 = vpop.permute.xlu1 %1014  ;;  %v1071_v52 = vpop.permute.xlu2 %1070  ;;  %v1086_v45 = vsel %vm3360_vm7, %v1073_v46, %v1077_v17  ;;  %v1088_v30 = vsel %vm3361_vm8, %v1069_v55, %v1073_v46  ;;  %v1122_v55 = vld [vmem:[%s3321_s3 + $0x20] sm:$0xff]  ;;  %vm3375_vm7 = vmmov %vm3372_vm2 }
 0x43a   :  { %v1028_v4 = vsel %vm3364_vm11, %v2847_v27, %v2845_v33  ;;  %v1102_v61 = vmul.f32 %v1094_v15, %v1088_v30  ;;  %v1103_v16 = vmul.f32 %v1095_v42, %v1086_v45  ;;  %vm3376_vm8 = vmmov %vm3372_vm2 }
 0x43b   :  { %v1046_v11 = vmul.f32 %v1038_v43, %v1028_v4 }
 0x441   :  { %v1083_v29 = vpop.permute.xlu1 %1082  ;;  %v1021_v51 = vpop.permute.xlu2 %1020 }
 0x442   :  { %v1085_v26 = vsel %vm3358_vm5, %v1079_v37, %v1083_v29  ;;  %v1091_v25 = vsel %vm3359_vm6, %v1083_v29, %v1071_v52  ;;  %vm3373_vm5 = vmmov %vm3372_vm2 }
 0x443   :  { %v1108_v53 = vmul.f32 %v1096_v14, %v1085_v26  ;;  %v1109_v54 = vmul.f32 %v1097_v5, %v1091_v25  ;;  %vm3374_vm6 = vmmov %vm3372_vm2 }
 0x445   :  { %1247 = vmatpush.msrb.mxu2 %v1108_v53  ;;  %1282 = vmatpush.msrb.mxu3 %v1109_v54 }
 0x447   :  { %1248 = vmatpush.msrb.mxu2 %v1104_v7  ;;  %1283 = vmatpush.msrb.mxu3 %v1105_v36  ;;  %v1075_v21 = vpop.permute.xlu0 %1074 }
 0x448   :  { %v1087_v44 = vsel %vm3362_vm9, %v1075_v21, %v1079_v37  ;;  %v1089_v60 = vsel %vm3363_vm10, %v1071_v52, %v1075_v21  ;;  %vm3377_vm9 = vmmov %vm3372_vm2  ;;  %vm3378_vm10 = vcmp.lt.s32.totalorder %v3355_v31, 127 }
 0x449   :  { %v1017_v24 = vpop.permute.xlu1 %1016  ;;  %1249 = vmatpush.msrb.mxu2 %v2809_v40  ;;  %1284 = vmatpush.msrb.mxu3 %v2816_v2  ;;  %v1106_v48 = vmul.f32 %v1094_v15, %v1089_v60  ;;  %v1107_v10 = vmul.f32 %v1095_v42, %v1087_v44  ;;  %v1013_v40 = vpop.permute.xlu2 %1012  ;;  %v1037_v2 = vperm.slane %v2863_v1, 1  ;;  %vm3379_vm11 = vmmov %vm3378_vm10 }
 0x44a   :  { %v1029_v35 = vsel %vm3365_vm15, %v1017_v24, %v1021_v51  ;;  %v1031_v0 = vsel %vm3366_vm1, %v1013_v40, %v1017_v24  ;;  %vm3380_vm15 = vmmov %vm3378_vm10 }
 0x44b   :  { %1250 = vmatpush.msrb.mxu2 %v2760_v34  ;;  %1285 = vmatpush.msrb.mxu3 %v2767_v50  ;;  %v1050_v32 = vmul.f32 %v1038_v43, %v1029_v35  ;;  %v1039_v34 = vperm.slane %v2863_v1, 3  ;;  %v1118_v50 = vld [vmem:[%s3321_s3] sm:$0xff]  ;;  %v1049_v47 = vmul.f32 %v1037_v2, %v1031_v0  ;;  %vm3381_vm1 = vmmov %vm3378_vm10 }
 0x44c   :  { %1177 = vmatpush.msrb.mxu0 %v1106_v48  ;;  %1212 = vmatpush.msrb.mxu1 %v1107_v10  ;;  %v1897_v0 = vld [vmem:[%s3317_s8 + $0x3] ss:$4 sm:$0xf] }
 0x44d   :  { %1251 = vmatpush.msrb.mxu2 %v1050_v32 }
 0x44e   :  { %1178 = vmatpush.msrb.mxu0 %v1102_v61  ;;  %1213 = vmatpush.msrb.mxu1 %v1103_v16  ;;  %v1896_v61 = vld [vmem:[%s3317_s8 + $0x2] ss:$4 sm:$0xf] }
 0x44f   :  { %1252 = vmatpush.msrb.mxu2 %v1046_v11  ;;  %v1025_v41 = vpop.permute.xlu0 %1024  ;;  %v1333_v16 = vperm.slane %v1896_v61, 0 }
 0x450   :  { %1179 = vmatpush.msrb.mxu0 %v2833_v23  ;;  %1214 = vmatpush.msrb.mxu1 %v2822_v39  ;;  %v1027_v57 = vsel %vm3367_vm0, %v1021_v51, %v1025_v41  ;;  %v1033_v20 = vsel %vm3368_vm4, %v1025_v41, %v1013_v40  ;;  %v1121_v23 = vld [vmem:[%s3321_s3 + $0x18] sm:$0xff]  ;;  %vm3383_vm0 = vmmov %vm3372_vm2 }
 0x451   :  { %1884 = vmatmul.msk.f32.vlgmr.msrb.gmra.mxu2 %vm1148_vm3, %v1118_v50  ;;  %v1023_v38 = vpop.permute.xlu1 %1022  ;;  %v1048_v58 = vmul.f32 %v1036_v19, %v1033_v20  ;;  %v1051_v28 = vmul.f32 %v1039_v34, %v1027_v57  ;;  %v1383_v57 = vperm.slane %v1897_v0, 0  ;;  %v1384_v20 = vperm.slane %v1897_v0, 1  ;;  %vm3384_vm4 = vmmov %vm3381_vm1 }
 0x452   :  { %1180 = vmatpush.msrb.mxu0 %v2753_v8  ;;  %1215 = vmatpush.msrb.mxu1 %v2795_v13  ;;  %v1026_v39 = vsel %vm3369_vm12, %v2845_v33, %v1023_v38  ;;  %v1123_v33 = vld [vmem:[%s3321_s3 + $0x28] sm:$0xff]  ;;  %vm3385_vm12 = vmmov %vm3381_vm1 }
 0x453   :  { %v1047_v6 = vmul.f32 %v1039_v34, %v1026_v39  ;;  %1286 = vmatpush.msrb.mxu3 %v1051_v28  ;;  %v1335_v34 = vperm.slane %v1896_v61, 2 }
 0x454   :  { %1181 = vmatpush.msrb.mxu0 %v1048_v58  ;;  %1216 = vmatpush.msrb.mxu1 %v1049_v47 }
 0x455   :  { %1287 = vmatpush.msrb.mxu3 %v1047_v6 }
 0x456   :  { %1890 = vmatmul.msk.f32.vlgmr.msrb.gmra.mxu3 %vm1148_vm3, %v1118_v50 }
 0x457   :  { %v1011_v12 = vpop.permute.xlu0 %1010 }
 0x458   :  { %v1030_v8 = vsel %vm3370_vm13, %v1011_v12, %v2847_v27  ;;  %v1032_v13 = vsel %vm3371_vm14, %v1023_v38, %v1011_v12  ;;  %vm3386_vm13 = vmmov %vm3381_vm1 }
 0x459   :  { %1885 = vmatmul.msk.f32.gmra.mxu2 %vm1148_vm3, %v1119_v62  ;;  %v1044_v63 = vmul.f32 %v1036_v19, %v1032_v13  ;;  %v1045_v56 = vmul.f32 %v1037_v2, %v1030_v8  ;;  %v1334_v2 = vperm.slane %v1896_v61, 1  ;;  %vm3387_vm14 = vmmov %vm3381_vm1 }
 0x45b   :  { %1182 = vmatpush.msrb.mxu0 %v1044_v63  ;;  %1217 = vmatpush.msrb.mxu1 %v1045_v56  ;;  %v1336_v56 = vperm.slane %v1896_v61, 3 }
 0x45c   :  { %1872 = vmatmul.msk.f32.vlgmr.msrb.gmra.mxu0 %vm1148_vm3, %v1118_v50  ;;  %1878 = vmatmul.msk.f32.vlgmr.msrb.gmra.mxu1 %vm1148_vm3, %v1118_v50 }
 0x45e   :  { %1891 = vmatmul.msk.f32.gmra.mxu3 %vm1148_vm3, %v1119_v62 }
 0x461   :  { %1886 = vmatmul.msk.f32.gmra.mxu2 %vm1148_vm3, %v1120_v9 }
 0x464   :  { %1873 = vmatmul.msk.f32.gmra.mxu0 %vm1148_vm3, %v1119_v62  ;;  %1879 = vmatmul.msk.f32.gmra.mxu1 %vm1148_vm3, %v1119_v62 }
 0x466   :  { %1892 = vmatmul.msk.f32.gmra.mxu3 %vm1148_vm3, %v1120_v9 }
 0x469   :  { %1887 = vmatmul.msk.f32.gmra.mxu2 %vm1148_vm3, %v1121_v23 }
 0x46c   :  { %1874 = vmatmul.msk.f32.gmra.mxu0 %vm1148_vm3, %v1120_v9  ;;  %1880 = vmatmul.msk.f32.gmra.mxu1 %vm1148_vm3, %v1120_v9 }
 0x46e   :  { %1893 = vmatmul.msk.f32.gmra.mxu3 %vm1148_vm3, %v1121_v23 }
 0x471   :  { %1888 = vmatmul.msk.f32.gmra.mxu2 %vm1148_vm3, %v1122_v55 }
 0x474   :  { %1875 = vmatmul.msk.f32.gmra.mxu0 %vm1148_vm3, %v1121_v23  ;;  %1881 = vmatmul.msk.f32.gmra.mxu1 %vm1148_vm3, %v1121_v23 }
 0x476   :  { %1894 = vmatmul.msk.f32.gmra.mxu3 %vm1148_vm3, %v1122_v55 }
 0x479   :  { %1889 = vmatmul.msk.f32.gmra.mxu2 %vm1148_vm3, %v1123_v33 }
 0x47c   :  { %1876 = vmatmul.msk.f32.gmra.mxu0 %vm1148_vm3, %v1122_v55  ;;  %1882 = vmatmul.msk.f32.gmra.mxu1 %vm1148_vm3, %v1122_v55 }
 0x47e   :  { %1895 = vmatmul.msk.f32.gmra.mxu3 %vm1148_vm3, %v1123_v33 }
 0x484   :  { %1877 = vmatmul.msk.f32.gmra.mxu0 %vm1148_vm3, %v1123_v33  ;;  %1883 = vmatmul.msk.f32.gmra.mxu1 %vm1148_vm3, %v1123_v33  ;;  %vm3382_vm3 = vmmov %vm3372_vm2 }
 0x4d4   :  { %v1254_v37 = vpop.f32.mrf.mxu2 }
 0x4d9   :  { %v1184_v49 = vpop.f32.mrf.mxu0  ;;  %v1219_v17 = vpop.f32.mrf.mxu1 }
 0x4da   :  { %1307 = vrot.lane.b32.xlu1 %v1184_v49, %s1981_s2  ;;  %1311 = vrot.lane.b32.xlu0 %v1219_v17, %s1981_s2  ;;  %v1289_v27 = vpop.f32.mrf.mxu3 }
 0x4db   :  { %1319 = vrot.lane.b32.xlu2 %v1289_v27, %s1981_s2 }
 0x4dc   :  { %v1257_v52 = vpop.f32.mrf.mxu2 }
 0x4e1   :  { %v1187_v46 = vpop.f32.mrf.mxu0  ;;  %v1222_v18 = vpop.f32.mrf.mxu1 }
 0x4e2   :  { %1315 = vrot.lane.b32.xlu1 %v1254_v37, %s1981_s2  ;;  %v1292_v29 = vpop.f32.mrf.mxu3 }
 0x4e3   :  { %1321 = vrot.lane.b32.xlu0 %v1292_v29, %s1981_s2  ;;  %1309 = vrot.lane.b32.xlu2 %v1187_v46, %s1981_s2 }
 0x4e4   :  { %v2952_v14 = vpop.f32.mrf.mxu2 }
 0x4e9   :  { %v2955_v5 = vpop.f32.mrf.mxu0  ;;  %v2957_v59 = vpop.f32.mrf.mxu1 }
 0x4ea   :  { %1313 = vrot.lane.b32.xlu1 %v1222_v18, %s1981_s2  ;;  %v2960_v22 = vpop.f32.mrf.mxu3 }
 0x4eb   :  { %1317 = vrot.lane.b32.xlu2 %v1257_v52, %s1981_s2 }
 0x4ec   :  { %v2962_v51 = vpop.f32.mrf.mxu2 }
 0x4f1   :  { %v2965_v26 = vpop.f32.mrf.mxu0  ;;  %v2967_v25 = vpop.f32.mrf.mxu1 }
 0x4f2   :  { %v2969_v54 = vpop.f32.mrf.mxu3 }
 0x4f4   :  { %v1266_v53 = vpop.f32.mrf.mxu2 }
 0x4f5   :  { %1365 = vrot.lane.b32.xlu1 %v1266_v53, %s1982_s20 }
 0x4f9   :  { %v1196_v7 = vpop.f32.mrf.mxu0  ;;  %v1231_v36 = vpop.f32.mrf.mxu1 }
 0x4fa   :  { %1357 = vrot.lane.b32.xlu0 %v1196_v7, %s1982_s20  ;;  %1361 = vrot.lane.b32.xlu2 %v1231_v36, %s1982_s20  ;;  %v1301_v1 = vpop.f32.mrf.mxu3  ;;  %v1385_v36 = vperm.slane %v1897_v0, 2 }
 0x4fc   :  { %v1269_v45 = vpop.f32.mrf.mxu2 }
 0x501   :  { %v1199_v21 = vpop.f32.mrf.mxu0  ;;  %v1234_v15 = vpop.f32.mrf.mxu1 }
 0x502   :  { %1359 = vrot.lane.b32.xlu1 %v1199_v21, %s1982_s20  ;;  %1363 = vrot.lane.b32.xlu0 %v1234_v15, %s1982_s20  ;;  %v1304_v42 = vpop.f32.mrf.mxu3 }
 0x503   :  { %1367 = vrot.lane.b32.xlu2 %v1269_v45, %s1982_s20 }
 0x50a   :  { %1371 = vrot.lane.b32.xlu1 %v1304_v42, %s1982_s20  ;;  %1369 = vrot.lane.b32.xlu0 %v1301_v1, %s1982_s20  ;;  %v1386_v1 = vperm.slane %v1897_v0, 3 }
 0x535   :  { %v1320_v30 = vpop.permute.xlu2 %1319 }
 0x53d   :  { %v1310_v60 = vpop.permute.xlu2 %1309 }
 0x545   :  { %v1318_v4 = vpop.permute.xlu2 %1317 }
 0x54c   :  { %v1308_v44 = vpop.permute.xlu1 %1307  ;;  %v1312_v43 = vpop.permute.xlu0 %1311 }
 0x54d   :  { %v1329_v11 = vsel %vm3372_vm2, %v1320_v30, %v1308_v44  ;;  %v1327_v19 = vsel %vm3373_vm5, %v1308_v44, %v1312_v43 }
 0x54e   :  { %v1341_v38 = vmul.f32 %v1333_v16, %v1329_v11  ;;  %v1342_v58 = vmul.f32 %v1334_v2, %v1327_v19 }
 0x550   :  { %v1349_v18 = vadd.f32 %v1341_v38, %v2955_v5  ;;  %v1350_v29 = vadd.f32 %v1342_v58, %v2957_v59 }
 0x554   :  { %v1316_v24 = vpop.permute.xlu1 %1315  ;;  %v1362_v32 = vpop.permute.xlu2 %1361 }
 0x555   :  { %v1322_v10 = vpop.permute.xlu0 %1321  ;;  %v1325_v28 = vsel %vm3376_vm8, %v1312_v43, %v1316_v24  ;;  %v1323_v55 = vsel %vm3382_vm3, %v1316_v24, %v1320_v30 }
 0x556   :  { %v1330_v41 = vsel %vm3374_vm6, %v1322_v10, %v1310_v60  ;;  %v1343_v33 = vmul.f32 %v1335_v34, %v1325_v28  ;;  %v1324_v37 = vsel %vm3383_vm0, %v1318_v4, %v1322_v10  ;;  %v1344_v45 = vmul.f32 %v1336_v56, %v1323_v55 }
 0x557   :  { %v1345_v9 = vmul.f32 %v1333_v16, %v1330_v41  ;;  %v1348_v15 = vmul.f32 %v1336_v56, %v1324_v37 }
 0x558   :  { %v1351_v21 = vadd.f32 %v1343_v33, %v2952_v14 }
 0x559   :  { %v1353_v53 = vadd.f32 %v1345_v9, %v2965_v26  ;;  %v1356_v61 = vadd.f32 %v1348_v15, %v2969_v54 }
 0x55c   :  { %v1314_v48 = vpop.permute.xlu1 %1313 }
 0x55d   :  { %v1368_v50 = vpop.permute.xlu2 %1367  ;;  %v1328_v47 = vsel %vm3375_vm7, %v1310_v60, %v1314_v48  ;;  %v1326_v39 = vsel %vm3377_vm9, %v1314_v48, %v1318_v4 }
 0x55e   :  { %v1346_v23 = vmul.f32 %v1334_v2, %v1328_v47  ;;  %v1347_v49 = vmul.f32 %v1335_v34, %v1326_v39 }
 0x560   :  { %v1354_v7 = vadd.f32 %v1346_v23, %v2967_v25  ;;  %v1355_v42 = vadd.f32 %v1347_v49, %v2962_v51 }
 0x567   :  { %v1366_v35 = vpop.permute.xlu1 %1365 }
 0x568   :  { %v1375_v12 = vsel %vm3378_vm10, %v1362_v32, %v1366_v35 }
 0x569   :  { %v1392_v27 = vmul.f32 %v1384_v20, %v1375_v12 }
 0x56b   :  { %v1400_v44 = vadd.f32 %v1392_v27, %v1350_v29 }
 0x56c   :  { %v1358_v40 = vpop.permute.xlu0 %1357 }
 0x56d   :  { %v1377_v8 = vsel %vm3379_vm11, %v1358_v40, %v1362_v32  ;;  %v1352_v32 = vadd.f32 %v1344_v45, %v2960_v22 }
 0x56e   :  { %v1391_v17 = vmul.f32 %v1383_v57, %v1377_v8 }
 0x570   :  { %v1399_v30 = vadd.f32 %v1391_v17, %v1349_v18 }
 0x572   :  { %v1407_v0 = vadd.f32 %v1400_v44, %v1399_v30 }
 0x574   :  { %v1360_v6 = vpop.permute.xlu1 %1359  ;;  %v1364_v62 = vpop.permute.xlu0 %1363 }
 0x575   :  { %v1378_v13 = vsel %vm3380_vm15, %v1360_v6, %v1364_v62  ;;  %v1376_v63 = vsel %vm3381_vm1, %v1364_v62, %v1368_v50 }
 0x576   :  { %v1395_v52 = vmul.f32 %v1383_v57, %v1378_v13  ;;  %v1396_v46 = vmul.f32 %v1384_v20, %v1376_v63 }
 0x578   :  { %v1403_v60 = vadd.f32 %v1395_v52, %v1353_v53  ;;  %v1404_v24 = vadd.f32 %v1396_v46, %v1354_v7  ;;  %v1491_v46 = vld [vmem:[%s3322_s7] sm:$0xff] }
 0x57a   :  { %v1412_v11 = vadd.f32 %v1404_v24, %v1403_v60 }
 0x57c   :  { %v1372_v43 = vpop.permute.xlu1 %1371  ;;  %v1370_v5 = vpop.permute.xlu0 %1369 }
 0x57d   :  { %v1374_v59 = vsel %vm3384_vm4, %v1368_v50, %v1372_v43  ;;  %v1380_v26 = vsel %vm3385_vm12, %v1372_v43, %v1360_v6  ;;  %v1373_v25 = vsel %vm3386_vm13, %v1366_v35, %v1370_v5  ;;  %v1379_v14 = vsel %vm3387_vm14, %v1370_v5, %v1358_v40 }
 0x57e   :  { %v1397_v4 = vmul.f32 %v1385_v36, %v1374_v59  ;;  %v1398_v51 = vmul.f32 %v1386_v1, %v1380_v26  ;;  %v1393_v48 = vmul.f32 %v1385_v36, %v1373_v25  ;;  %v1394_v10 = vmul.f32 %v1386_v1, %v1379_v14  ;;  %v1447_v59 = vld [vmem:[%s3323_s6] sm:$0xff]  ;;  %v1448_v25 = vld [vmem:[%s3323_s6 + $0x8] sm:$0xff] }
 0x580   :  { %v1405_v16 = vadd.f32 %v1397_v4, %v1355_v42  ;;  %v1401_v2 = vadd.f32 %v1393_v48, %v1351_v21  ;;  %v1402_v19 = vadd.f32 %v1394_v10, %v1352_v32  ;;  %v1406_v50 = vadd.f32 %v1398_v51, %v1356_v61  ;;  %v1492_v32 = vld [vmem:[%s3322_s7 + $0x8] sm:$0xff] }
 0x582   :  { %v1408_v34 = vadd.f32 %v1407_v0, %v1401_v2  ;;  %v1413_v41 = vadd.f32 %v1412_v11, %v1405_v16 }
 0x584   :  { %v1409_v35 = vadd.f32 %v1408_v34, %v1402_v19  ;;  %v1414_v47 = vadd.f32 %v1413_v41, %v1406_v50 }
 0x586   :  { %1410 = vadd.xlane.f32.xlu2 %v1409_v35  ;;  %1415 = vadd.xlane.f32.xlu0 %v1414_v47 }
 0x5f9   :  { %v1416_v31 = vpop.xlane.xlu0 %1415  ;;  %v1411_v40 = vpop.xlane.xlu2 %1410 }
 0x5fa   :  { %v1418_v57 = vmul.f32 0.001953125, %v1416_v31  ;;  %v1417_v20 = vmul.f32 0.001953125, %v1411_v40 }
 0x5fc   :  { %v3025_v38 = vsub.f32 %v1403_v60, %v1418_v57  ;;  %v3027_v22 = vsub.f32 %v1404_v24, %v1418_v57  ;;  %v3029_v54 = vsub.f32 %v1399_v30, %v1417_v20  ;;  %v3031_v58 = vsub.f32 %v1400_v44, %v1417_v20 }
 0x5fd   :  { %v3033_v28 = vsub.f32 %v1405_v16, %v1418_v57  ;;  %v3035_v39 = vsub.f32 %v1406_v50, %v1418_v57  ;;  %v1421_v6 = vsub.f32 %v1401_v2, %v1417_v20  ;;  %v1422_v62 = vsub.f32 %v1402_v19, %v1417_v20 }
 0x5fe   :  { %v1431_v12 = vmul.f32 %v3025_v38, %v3025_v38  ;;  %v1432_v8 = vmul.f32 %v3027_v22, %v3027_v22  ;;  %v1427_v13 = vmul.f32 %v3029_v54, %v3029_v54  ;;  %v1428_v63 = vmul.f32 %v3031_v58, %v3031_v58 }
 0x5ff   :  { %v1433_v56 = vmul.f32 %v3033_v28, %v3033_v28  ;;  %v1429_v23 = vmul.f32 %v1421_v6, %v1421_v6  ;;  %v1434_v33 = vmul.f32 %v3035_v39, %v3035_v39  ;;  %v1430_v49 = vmul.f32 %v1422_v62, %v1422_v62 }
 0x600   :  { %v1440_v9 = vadd.f32 %v1432_v8, %v1431_v12  ;;  %v1435_v55 = vadd.f32 %v1428_v63, %v1427_v13 }
 0x602   :  { %v1441_v37 = vadd.f32 %v1440_v9, %v1433_v56  ;;  %v1436_v17 = vadd.f32 %v1435_v55, %v1429_v23 }
 0x604   :  { %v1442_v27 = vadd.f32 %v1441_v37, %v1434_v33  ;;  %v1437_v52 = vadd.f32 %v1436_v17, %v1430_v49 }
 0x606   :  { %1443 = vadd.xlane.f32.xlu2 %v1442_v27  ;;  %1438 = vadd.xlane.f32.xlu1 %v1437_v52 }
 0x61e   :  { %1495 = vperm.xlu2 %1906, %v1491_v46  }
 0x679   :  { %v1439_v18 = vpop.xlane.xlu1 %1438  ;;  %v1444_v29 = vpop.xlane.xlu2 %1443 }
 0x67a   :  { %v1445_v53 = vmul.f32 0.001953125, %v1439_v18  ;;  %v1446_v7 = vmul.f32 0.001953125, %v1444_v29 }
 0x67c   :  { %v1449_v36 = vadd.f32 1e-05, %v1445_v53  ;;  %v1450_v1 = vadd.f32 1e-05, %v1446_v7 }
 0x67e   :  { %1943 = vrsqrt.f32 %v1449_v36  ;;  %vm1457_vm6 = vweird.f32 %v1449_v36  ;;  %vm1467_vm8 = vweird.f32 %v1450_v1 }
 0x67f   :  { %1945 = vrsqrt.f32 %v1450_v1 }
 0x681   :  { %v1496_v19 = vpop.permute.xlu2 %1495 }
 0x684   :  { %v1944_v45 = vpop.eup %1943 }
 0x685   :  { %v1946_v21 = vpop.eup %1945  ;;  %v1452_v15 = vmul.f32 %v1944_v45, %v1449_v36  ;;  %vm1458_vm2 = vweird.f32 %v1944_v45 }
 0x686   :  { %v1462_v42 = vmul.f32 %v1946_v21, %v1450_v1  ;;  %vm1468_vm5 = vweird.f32 %v1946_v21  ;;  %vm1459_vm7 = vmor %vm1457_vm6, %vm1458_vm2 }
 0x687   :  { %v1453_v30 = vmul.f32 %v1944_v45, %v1452_v15  ;;  %vm1469_vm9 = vmor %vm1467_vm8, %vm1468_vm5 }
 0x688   :  { %v1463_v44 = vmul.f32 %v1946_v21, %v1462_v42 }
 0x689   :  { %v1454_v60 = vmul.f32 0.5, %v1453_v30 }
 0x68a   :  { %v1464_v24 = vmul.f32 0.5, %v1463_v44 }
 0x68b   :  { %v1455_v43 = vsub.f32 1.5, %v1454_v60 }
 0x68c   :  { %v1465_v5 = vsub.f32 1.5, %v1464_v24 }
 0x68d   :  { %v1456_v26 = vmul.f32 %v1944_v45, %v1455_v43 }
 0x68e   :  { %v1466_v14 = vmul.f32 %v1946_v21, %v1465_v5 }
 0x68f   :  { %v1460_v4 = vsel %vm1459_vm7, %v1944_v45, %v1456_v26 }
 0x690   :  { %v1471_v51 = vmul.f32 %v1460_v4, %v1447_v59  ;;  %v1470_v48 = vsel %vm1469_vm9, %v1946_v21, %v1466_v14 }
 0x691   :  { %v1472_v10 = vmul.f32 %v1470_v48, %v1448_v25 }
 0x692   :  { %1475 = vperm.xlu0 %1904, %v1471_v51  }
 0x693   :  { %1480 = vperm.xlu1 %1905, %v1472_v10  }
 0x69a   :  { %1500 = vperm.xlu0 %1904, %v1492_v32  }
 0x704   :  { %v1476_v61 = vpop.permute.xlu0 %1475 }
 0x705   :  { %v1483_v16 = vmul.f32 %v1476_v61, %v3029_v54  ;;  %v1484_v2 = vmul.f32 %v1476_v61, %v3031_v58  ;;  %v1485_v0 = vmul.f32 %v1476_v61, %v1421_v6  ;;  %v1486_v11 = vmul.f32 %v1476_v61, %v1422_v62 }
 0x707   :  { %v1503_v34 = vadd.f32 %v1496_v19, %v1483_v16  ;;  %v1504_v50 = vadd.f32 %v1496_v19, %v1484_v2  ;;  %v3063_v41 = vadd.f32 %v1496_v19, %v1485_v0  ;;  %v3065_v35 = vadd.f32 %v1496_v19, %v1486_v11 }
 0x709   :  { %v3067_v47 = vmul.f32 0.70710677, %v1503_v34  ;;  %v3069_v31 = vmul.f32 0.70710677, %v1504_v50  ;;  %v3072_v40 = vmul.f32 0.70710677, %v3063_v41 }
 0x70a   :  { %v3075_v57 = vmul.f32 0.70710677, %v3065_v35  ;;  %v3096_v17 = vmul.f32 0.5, %v1503_v34  ;;  %v3098_v46 = vmul.f32 0.5, %v1504_v50 }
 0x70b   :  { %v3078_v20 = vand.u32 2147483647, %v3067_v47  ;;  %v3081_v54 = vand.u32 2147483647, %v3069_v31  ;;  %v3084_v58 = vand.u32 2147483647, %v3072_v40 }
 0x70c   :  { %v3087_v6 = vand.u32 2147483647, %v3075_v57 }
 0x70d   :  { %v1551_v62 = vmul.f32 0.3275911, %v3078_v20  ;;  %v1552_v12 = vmul.f32 0.3275911, %v3081_v54  ;;  %v1553_v8 = vmul.f32 0.3275911, %v3084_v58 }
 0x70e   :  { %v1554_v13 = vmul.f32 0.3275911, %v3087_v6  ;;  %v1759_v26 = vsub.f32 0.0, %v3078_v20  ;;  %v1760_v10 = vsub.f32 0.0, %v3081_v54  ;;  %v1761_v11 = vsub.f32 0.0, %v3084_v58 }
 0x70f   :  { %v1559_v63 = vadd.f32 1.0, %v1551_v62  ;;  %v1560_v56 = vadd.f32 1.0, %v1552_v12  ;;  %v1561_v9 = vadd.f32 1.0, %v1553_v8  ;;  %v1762_v19 = vsub.f32 0.0, %v3087_v6  ;;  %v1481_v12 = vpop.permute.xlu1 %1480 }
 0x710   :  { %v3093_v23 = vadd.f32 1.0, %v1554_v13  ;;  %v1488_v7 = vmul.f32 %v1481_v12, %v3027_v22 }
 0x711   :  { %1947 = vrcp.f32 %v1559_v63  ;;  %v1576_v55 = vand.u32 2147483647, %v1559_v63  ;;  %v1578_v33 = vand.u32 2147483648, %v1559_v63  ;;  %v1591_v37 = vand.u32 2147483647, %v1560_v56 }
 0x712   :  { %1949 = vrcp.f32 %v1560_v56  ;;  %v1593_v49 = vand.u32 2147483648, %v1560_v56  ;;  %v1606_v27 = vand.u32 2147483647, %v1561_v9  ;;  %vm1572_vm10 = vweird.f32 %v1559_v63 }
 0x713   :  { %1951 = vrcp.f32 %v1561_v9  ;;  %vm1587_vm11 = vweird.f32 %v1560_v56  ;;  %v1608_v18 = vand.u32 2147483648, %v1561_v9  ;;  %vm3100_vm15 = vcmp.eq.f32.partialorder %v1576_v55, 8.507059e+37 }
 0x714   :  { %1953 = vrcp.f32 %v3093_v23  ;;  %v1579_v36 = vor.u32 1.1754944e-38, %v1578_v33  ;;  %vm1602_vm1 = vweird.f32 %v1561_v9  ;;  %vm3104_vm3 = vcmp.eq.f32.partialorder %v1591_v37, 8.507059e+37 }
 0x715   :  { %v1594_v15 = vor.u32 1.1754944e-38, %v1593_v49  ;;  %v1621_v42 = vand.u32 2147483647, %v3093_v23  ;;  %vm3109_vm0 = vcmp.eq.f32.partialorder %v1606_v27, 8.507059e+37  ;;  %vm1617_vm4 = vweird.f32 %v3093_v23  ;;  %v1501_v27 = vpop.permute.xlu0 %1500 }
 0x716   :  { %v1609_v5 = vor.u32 1.1754944e-38, %v1608_v18  ;;  %v1623_v59 = vand.u32 2147483648, %v3093_v23  ;;  %v1768_v55 = vmul.f32 %v1760_v10, %v3081_v54  ;;  %v1769_v54 = vmul.f32 %v1761_v11, %v3084_v58 }
 0x717   :  { %v1948_v52 = vpop.eup %1947  ;;  %vm3117_vm14 = vcmp.eq.f32.partialorder %v1621_v42, 8.507059e+37  ;;  %v1770_v22 = vmul.f32 %v1762_v19, %v3087_v6 }
 0x718   :  { %v1950_v29 = vpop.eup %1949  ;;  %v1568_v53 = vmul.f32 %v1948_v52, %v1559_v63  ;;  %vm1573_vm12 = vweird.f32 %v1948_v52  ;;  %v1624_v0 = vor.u32 1.1754944e-38, %v1623_v59  ;;  %v1767_v63 = vmul.f32 %v1759_v26, %v3078_v20 }
 0x719   :  { %v1952_v1 = vpop.eup %1951  ;;  %v1583_v45 = vmul.f32 %v1950_v29, %v1560_v56  ;;  %vm1588_vm13 = vweird.f32 %v1950_v29  ;;  %vm1574_vm5 = vmor %vm1572_vm10, %vm1573_vm12  ;;  %v1779_v59 = vmul.f32 1.442695, %v1769_v54  ;;  %v1490_v26 = vmul.f32 %v1481_v12, %v3035_v39 }
 0x71a   :  { %v1569_v30 = vsub.f32 1.0, %v1568_v53  ;;  %v1598_v44 = vmul.f32 %v1952_v1, %v1561_v9  ;;  %v1954_v24 = vpop.eup %1953  ;;  %vm1603_vm2 = vweird.f32 %v1952_v1  ;;  %vm1589_vm6 = vmor %vm1587_vm11, %vm1588_vm13  ;;  %v1487_v9 = vmul.f32 %v1481_v12, %v3025_v38 }
 0x71b   :  { %v1584_v43 = vsub.f32 1.0, %v1583_v45  ;;  %v1613_v4 = vmul.f32 %v1954_v24, %v3093_v23  ;;  %vm1618_vm7 = vweird.f32 %v1954_v24  ;;  %vm1604_vm8 = vmor %vm1602_vm1, %vm1603_vm2  ;;  %v1489_v23 = vmul.f32 %v1481_v12, %v3033_v28 }
 0x71c   :  { %v1570_v25 = vmul.f32 %v1948_v52, %v1569_v30  ;;  %v1599_v14 = vsub.f32 1.0, %v1598_v44  ;;  %vm1619_vm9 = vmor %vm1617_vm4, %vm1618_vm7  ;;  %v3155_v45 = vadd.f32 %v1501_v27, %v1487_v9  ;;  %v1775_v30 = vmul.f32 1.442695, %v1767_v63 }
 0x71d   :  { %v1585_v51 = vmul.f32 %v1950_v29, %v1584_v43  ;;  %v1614_v16 = vsub.f32 1.0, %v1613_v4  ;;  %v3163_v44 = vadd.f32 %v1501_v27, %v1489_v23  ;;  %v1777_v43 = vmul.f32 1.442695, %v1768_v55 }
 0x71e   :  { %v1571_v32 = vadd.f32 %v1948_v52, %v1570_v25  ;;  %v1600_v61 = vmul.f32 %v1952_v1, %v1599_v14  ;;  %v3168_v25 = vmul.f32 0.70710677, %v3155_v45  ;;  %1955 = vpow2.f32 %v1775_v30 }
 0x71f   :  { %v1586_v2 = vadd.f32 %v1950_v29, %v1585_v51  ;;  %v1615_v62 = vmul.f32 %v1954_v24, %v1614_v16  ;;  %v3176_v10 = vadd.f32 %v1501_v27, %v1490_v26  ;;  %1957 = vpow2.f32 %v1777_v43 }
 0x720   :  { %v1575_v34 = vsel %vm1574_vm5, %v1948_v52, %v1571_v32  ;;  %v1601_v50 = vadd.f32 %v1952_v1, %v1600_v61  ;;  %v3179_v32 = vmul.f32 0.70710677, %v3163_v44  ;;  %1959 = vpow2.f32 %v1779_v59 }
 0x721   :  { %v3128_v8 = vsel %vm3100_vm15, %v1579_v36, %v1575_v34  ;;  %v1590_v13 = vsel %vm1589_vm6, %v1950_v29, %v1586_v2  ;;  %v1616_v37 = vadd.f32 %v1954_v24, %v1615_v62  ;;  %v3183_v11 = vand.u32 2147483647, %v3168_v25 }
 0x722   :  { %v3136_v56 = vsel %vm3104_vm3, %v1594_v15, %v1590_v13  ;;  %v1605_v33 = vsel %vm1604_vm8, %v1952_v1, %v1601_v50  ;;  %v1687_v49 = vmul.f32 1.0614054, %v3128_v8  ;;  %v3159_v15 = vadd.f32 %v1501_v27, %v1488_v7 }
 0x723   :  { %v3141_v52 = vsel %vm3109_vm0, %v1609_v5, %v1605_v33  ;;  %v1688_v20 = vmul.f32 1.0614054, %v3136_v56  ;;  %v1620_v18 = vsel %vm1619_vm9, %v1954_v24, %v1616_v37  ;;  %v3192_v13 = vmul.f32 0.70710677, %v3176_v10 }
 0x724   :  { %v1689_v29 = vmul.f32 1.0614054, %v3141_v52  ;;  %v1695_v53 = vadd.f32 -1.4531521, %v1687_v49  ;;  %v3152_v36 = vsel %vm3117_vm14, %v1624_v0, %v1620_v18  ;;  %v3173_v51 = vmul.f32 0.70710677, %v3159_v15 }
 0x725   :  { %v1696_v1 = vadd.f32 -1.4531521, %v1688_v20  ;;  %v1690_v21 = vmul.f32 1.0614054, %v3152_v36  ;;  %v1781_v0 = vmul.f32 1.442695, %v1770_v22  ;;  %v1956_v20 = vpop.eup %1955 }
 0x726   :  { %v1697_v58 = vadd.f32 -1.4531521, %v1689_v29  ;;  %v1703_v38 = vmul.f32 %v1695_v53, %v3128_v8  ;;  %v3188_v62 = vand.u32 2147483647, %v3173_v51  ;;  %v3195_v63 = vand.u32 2147483647, %v3179_v32  ;;  %v1958_v29 = vpop.eup %1957 }
 0x727   :  { %v1704_v42 = vmul.f32 %v1696_v1, %v3136_v56  ;;  %v1698_v60 = vadd.f32 -1.4531521, %v1690_v21  ;;  %v1555_v55 = vmul.f32 0.3275911, %v3183_v11  ;;  %v1513_v54 = vmul.f32 0.5, %v3063_v41  ;;  %v1960_v21 = vpop.eup %1959 }
 0x728   :  { %v1705_v24 = vmul.f32 %v1697_v58, %v3141_v52  ;;  %v1711_v28 = vadd.f32 1.4214138, %v1703_v38  ;;  %v1556_v27 = vmul.f32 0.3275911, %v3188_v62  ;;  %1961 = vpow2.f32 %v1781_v0 }
 0x729   :  { %v1712_v5 = vadd.f32 1.4214138, %v1704_v42  ;;  %v1706_v14 = vmul.f32 %v1698_v60, %v3152_v36  ;;  %v1557_v18 = vmul.f32 0.3275911, %v3195_v63  ;;  %v3204_v23 = vadd.f32 1.0, %v1555_v55 }
 0x72a   :  { %v1713_v4 = vadd.f32 1.4214138, %v1705_v24  ;;  %v1719_v6 = vmul.f32 %v1711_v28, %v3128_v8  ;;  %vm1527_vm10 = vcmp.lt.f32.partialorder %v3067_v47, 0.0  ;;  %v3209_v38 = vand.u32 2147483647, %v3192_v13 }
 0x72b   :  { %v1720_v48 = vmul.f32 %v1712_v5, %v3136_v56  ;;  %v1714_v39 = vadd.f32 1.4214138, %v1706_v14  ;;  %v3211_v41 = vadd.f32 1.0, %v1556_v27  ;;  %1963 = vrcp.f32 %v3204_v23 }
 0x72c   :  { %v1721_v61 = vmul.f32 %v1713_v4, %v3141_v52  ;;  %v1727_v16 = vadd.f32 -0.28449672, %v1719_v6  ;;  %vm1528_vm11 = vcmp.lt.f32.partialorder %v3069_v31, 0.0  ;;  %vm1529_vm15 = vcmp.lt.f32.partialorder %v3072_v40, 0.0 }
 0x72d   :  { %v1728_v2 = vadd.f32 -0.28449672, %v1720_v48  ;;  %v1722_v19 = vmul.f32 %v1714_v39, %v3152_v36  ;;  %v3217_v60 = vadd.f32 1.0, %v1557_v18  ;;  %1965 = vrcp.f32 %v3211_v41 }
 0x72e   :  { %v1729_v34 = vadd.f32 -0.28449672, %v1721_v61  ;;  %v1735_v50 = vmul.f32 %v1727_v16, %v3128_v8  ;;  %v1962_v43 = vpop.eup %1961  ;;  %vm1530_vm1 = vcmp.lt.f32.partialorder %v3075_v57, 0.0  ;;  %v1558_v31 = vmul.f32 0.3275911, %v3209_v38 }
 0x72f   :  { %v1736_v12 = vmul.f32 %v1728_v2, %v3136_v56  ;;  %v1730_v33 = vadd.f32 -0.28449672, %v1722_v19  ;;  %v1536_v59 = vsel %vm1528_vm11, -1.0, %v3345_v3  ;;  %v1537_v6 = vsel %vm1529_vm15, -1.0, %v3345_v3 }
 0x730   :  { %v1737_v37 = vmul.f32 %v1729_v34, %v3141_v52  ;;  %v1743_v49 = vadd.f32 0.2548296, %v1735_v50  ;;  %1967 = vrcp.f32 %v3217_v60  ;;  %v1538_v47 = vsel %vm1530_vm1, -1.0, %v3345_v3 }
 0x731   :  { %v1744_v9 = vadd.f32 0.2548296, %v1736_v12  ;;  %v1738_v53 = vmul.f32 %v1730_v33, %v3152_v36  ;;  %v1964_v57 = vpop.eup %1963  ;;  %v3233_v0 = vadd.f32 1.0, %v1558_v31  ;;  %vm1632_vm3 = vweird.f32 %v3204_v23 }
 0x732   :  { %v1745_v7 = vadd.f32 0.2548296, %v1737_v37  ;;  %v1751_v1 = vmul.f32 %v1743_v49, %v3128_v8  ;;  %v1628_v19 = vmul.f32 %v1964_v57, %v3204_v23  ;;  %v1636_v12 = vand.u32 2147483647, %v3204_v23 }
 0x733   :  { %v1752_v58 = vmul.f32 %v1744_v9, %v3136_v56  ;;  %v1746_v42 = vadd.f32 0.2548296, %v1738_v53  ;;  %v1638_v37 = vand.u32 2147483648, %v3204_v23  ;;  %v1651_v9 = vand.u32 2147483647, %v3211_v41 }
 0x734   :  { %v1753_v22 = vmul.f32 %v1745_v7, %v3141_v52  ;;  %v1791_v30 = vmul.f32 %v1956_v20, %v1751_v1  ;;  %v1535_v52 = vsel %vm1527_vm10, -1.0, %v3345_v3  ;;  %v1629_v33 = vsub.f32 1.0, %v1628_v19 }
 0x735   :  { %v1792_v8 = vmul.f32 %v1958_v29, %v1752_v58  ;;  %v1754_v56 = vmul.f32 %v1746_v42, %v3152_v36  ;;  %v1514_v36 = vmul.f32 0.5, %v3065_v35  ;;  %v1966_v35 = vpop.eup %1965  ;;  %v1653_v18 = vand.u32 2147483648, %v3211_v41 }
 0x736   :  { %v1793_v24 = vmul.f32 %v1960_v21, %v1753_v22  ;;  %v1799_v28 = vsub.f32 1.0, %v1791_v30  ;;  %v1643_v49 = vmul.f32 %v1966_v35, %v3211_v41  ;;  %vm1633_vm0 = vweird.f32 %v1964_v57 }
 0x737   :  { %v1800_v5 = vsub.f32 1.0, %v1792_v8  ;;  %v1794_v26 = vmul.f32 %v1962_v43, %v1754_v56  ;;  %1969 = vrcp.f32 %v3233_v0  ;;  %vm3254_vm4 = vcmp.eq.f32.partialorder %v1636_v12, 8.507059e+37  ;;  %vm1634_vm13 = vmor %vm1632_vm3, %vm1633_vm0 }
 0x738   :  { %v1801_v14 = vsub.f32 1.0, %v1793_v24  ;;  %v1807_v4 = vmul.f32 %v1799_v28, %v1535_v52  ;;  %v1644_v29 = vsub.f32 1.0, %v1643_v49  ;;  %v1666_v1 = vand.u32 2147483647, %v3217_v60 }
 0x739   :  { %v1808_v48 = vmul.f32 %v1800_v5, %v1536_v59  ;;  %v1802_v39 = vsub.f32 1.0, %v1794_v26  ;;  %vm1648_vm12 = vweird.f32 %v1966_v35  ;;  %v1668_v42 = vand.u32 2147483648, %v3217_v60 }
 0x73a   :  { %v1809_v61 = vmul.f32 %v1801_v14, %v1537_v6  ;;  %v1815_v16 = vadd.f32 1.0, %v1807_v4  ;;  %v1645_v58 = vmul.f32 %v1966_v35, %v1644_v29  ;;  %v1639_v22 = vor.u32 1.1754944e-38, %v1638_v37 }
 0x73b   :  { %v1816_v2 = vadd.f32 1.0, %v1808_v48  ;;  %v1810_v34 = vmul.f32 %v1802_v39, %v1538_v47  ;;  %vm1647_vm14 = vweird.f32 %v3211_v41  ;;  %vm1662_vm2 = vweird.f32 %v3217_v60 }
 0x73c   :  { %v1817_v40 = vadd.f32 1.0, %v1809_v61  ;;  %v1823_v50 = vmul.f32 %v1815_v16, %v3096_v17  ;;  %v1968_v17 = vpop.eup %1967  ;;  %v1646_v56 = vadd.f32 %v1966_v35, %v1645_v58  ;;  %vm1652_vm5 = vcmp.eq.f32.partialorder %v1651_v9, 8.507059e+37  ;;  %vm1649_vm6 = vmor %vm1647_vm14, %vm1648_vm12 }
 0x73d   :  { %v1824_v55 = vmul.f32 %v1816_v2, %v3098_v46  ;;  %v1818_v27 = vadd.f32 1.0, %v1810_v34  ;;  %v1630_v46 = vmul.f32 %v1964_v57, %v1629_v33  ;;  %v1658_v7 = vmul.f32 %v1968_v17, %v3217_v60  ;;  %v1970_v52 = vpop.eup %1969 }
 0x73e   :  { %v1825_v20 = vmul.f32 %v1817_v40, %v1513_v54  ;;  %1831 = vst [vmem:[%s3324_s9] sm:$0xff] %v1823_v50  ;;  %v1654_v24 = vor.u32 1.1754944e-38, %v1653_v18  ;;  %vm1663_vm7 = vweird.f32 %v1968_v17  ;;  %v1763_v23 = vsub.f32 0.0, %v3183_v11 }
 0x73f   :  { %1832 = vst [vmem:[%s3324_s9 + $0x8] sm:$0xff] %v1824_v55  ;;  %v1826_v53 = vmul.f32 %v1818_v27, %v1514_v36  ;;  %v1631_v21 = vadd.f32 %v1964_v57, %v1630_v46  ;;  %v1659_v30 = vsub.f32 1.0, %v1658_v7  ;;  %v1650_v5 = vsel %vm1649_vm6, %v1966_v35, %v1646_v56  ;;  %vm1664_vm9 = vmor %vm1662_vm2, %vm1663_vm7 }
 0x740   :  { %1833 = vst [vmem:[%s3324_s9 + $0x10] sm:$0xff] %v1825_v20  ;;  %vm1667_vm8 = vcmp.eq.f32.partialorder %v1666_v1, 8.507059e+37  ;;  %v1669_v41 = vor.u32 1.1754944e-38, %v1668_v42  ;;  %v1655_v59 = vsel %vm1652_vm5, %v1654_v24, %v1650_v5  ;;  %v1673_v14 = vmul.f32 %v1970_v52, %v3233_v0 }
 0x741   :  { %1834 = vst [vmem:[%s3324_s9 + $0x18] sm:$0xff] %v1826_v53  ;;  %v1635_v8 = vsel %vm1634_vm13, %v1964_v57, %v1631_v21  ;;  %v1660_v43 = vmul.f32 %v1968_v17, %v1659_v30  ;;  %v1764_v4 = vsub.f32 0.0, %v3188_v62  ;;  %v1681_v36 = vand.u32 2147483647, %v3233_v0 }
 0x742   :  { %v3270_v28 = vsel %vm3254_vm4, %v1639_v22, %v1635_v8  ;;  %v1692_v6 = vmul.f32 1.0614054, %v1655_v59  ;;  %v1674_v47 = vsub.f32 1.0, %v1673_v14  ;;  %v1683_v39 = vand.u32 2147483648, %v3233_v0 }
 0x743   :  { %v1691_v31 = vmul.f32 1.0614054, %v3270_v28  ;;  %v1661_v26 = vadd.f32 %v1968_v17, %v1660_v43  ;;  %v1771_v61 = vmul.f32 %v1763_v23, %v3183_v11  ;;  %v1765_v35 = vsub.f32 0.0, %v3195_v63 }
 0x744   :  { %v1700_v2 = vadd.f32 -1.4531521, %v1692_v6  ;;  %v1675_v34 = vmul.f32 %v1970_v52, %v1674_v47  ;;  %vm1678_vm10 = vweird.f32 %v1970_v52  ;;  %v1772_v40 = vmul.f32 %v1764_v4, %v3188_v62 }
 0x745   :  { %v1699_v48 = vadd.f32 -1.4531521, %v1691_v31  ;;  %v1665_v57 = vsel %vm1664_vm9, %v1968_v17, %v1661_v26  ;;  %vm1677_vm11 = vweird.f32 %v3233_v0  ;;  %v1783_v37 = vmul.f32 1.442695, %v1771_v61 }
 0x746   :  { %v1670_v16 = vsel %vm1667_vm8, %v1669_v41, %v1665_v57  ;;  %v1708_v50 = vmul.f32 %v1700_v2, %v1655_v59  ;;  %v1676_v55 = vadd.f32 %v1970_v52, %v1675_v34  ;;  %vm1679_vm15 = vmor %vm1677_vm11, %vm1678_vm10  ;;  %v1684_v11 = vor.u32 1.1754944e-38, %v1683_v39 }
 0x747   :  { %v1707_v19 = vmul.f32 %v1699_v48, %v3270_v28  ;;  %v1693_v60 = vmul.f32 1.0614054, %v1670_v16  ;;  %v1773_v20 = vmul.f32 %v1765_v35, %v3195_v63  ;;  %vm1682_vm1 = vcmp.eq.f32.partialorder %v1681_v36, 8.507059e+37 }
 0x748   :  { %v1716_v49 = vadd.f32 1.4214138, %v1708_v50  ;;  %v1680_v9 = vsel %vm1679_vm15, %v1970_v52, %v1676_v55  ;;  %v1785_v17 = vmul.f32 1.442695, %v1772_v40  ;;  %v1766_v53 = vsub.f32 0.0, %v3209_v38 }
 0x749   :  { %v1715_v12 = vadd.f32 1.4214138, %v1707_v19  ;;  %v1701_v33 = vadd.f32 -1.4531521, %v1693_v60  ;;  %v1685_v46 = vsel %vm1682_vm1, %v1684_v11, %v1680_v9  ;;  %1971 = vpow2.f32 %v1783_v37 }
 0x74a   :  { %v1724_v62 = vmul.f32 %v1716_v49, %v1655_v59  ;;  %v1694_v54 = vmul.f32 1.0614054, %v1685_v46  ;;  %v1787_v21 = vmul.f32 1.442695, %v1773_v20  ;;  %1973 = vpow2.f32 %v1785_v17 }
 0x74b   :  { %v1723_v27 = vmul.f32 %v1715_v12, %v3270_v28  ;;  %v1709_v18 = vmul.f32 %v1701_v33, %v1670_v16  ;;  %v1774_v30 = vmul.f32 %v1766_v53, %v3209_v38  ;;  %vm1531_vm3 = vcmp.lt.f32.partialorder %v3168_v25, 0.0 }
 0x74c   :  { %v1732_v7 = vadd.f32 -0.28449672, %v1724_v62  ;;  %v1702_v58 = vadd.f32 -1.4531521, %v1694_v54  ;;  %1975 = vpow2.f32 %v1787_v21  ;;  %vm1532_vm0 = vcmp.lt.f32.partialorder %v3173_v51, 0.0 }
 0x74d   :  { %v1731_v29 = vadd.f32 -0.28449672, %v1723_v27  ;;  %v1717_v0 = vadd.f32 1.4214138, %v1709_v18  ;;  %v1789_v31 = vmul.f32 1.442695, %v1774_v30 }
 0x74e   :  { %v1740_v63 = vmul.f32 %v1732_v7, %v1655_v59  ;;  %v1710_v8 = vmul.f32 %v1702_v58, %v1685_v46  ;;  %v1539_v48 = vsel %vm1531_vm3, -1.0, %v3345_v3  ;;  %vm1533_vm4 = vcmp.lt.f32.partialorder %v3179_v32, 0.0 }
 0x74f   :  { %v1739_v1 = vmul.f32 %v1731_v29, %v3270_v28  ;;  %v1725_v42 = vmul.f32 %v1717_v0, %v1670_v16  ;;  %v1972_v23 = vpop.eup %1971  ;;  %1977 = vpow2.f32 %v1789_v31  ;;  %v1540_v25 = vsel %vm1532_vm0, -1.0, %v3345_v3 }
 0x750   :  { %v1748_v24 = vadd.f32 0.2548296, %v1740_v63  ;;  %v1718_v52 = vadd.f32 1.4214138, %v1710_v8  ;;  %v1974_v14 = vpop.eup %1973  ;;  %v1515_v19 = vmul.f32 0.5, %v3155_v45  ;;  %v1516_v40 = vmul.f32 0.5, %v3159_v15 }
 0x751   :  { %v1747_v22 = vadd.f32 0.2548296, %v1739_v1  ;;  %v1733_v56 = vadd.f32 -0.28449672, %v1725_v42  ;;  %v1517_v45 = vmul.f32 0.5, %v3163_v44  ;;  %vm1534_vm12 = vcmp.lt.f32.partialorder %v3192_v13, 0.0 }
 0x752   :  { %v1756_v41 = vmul.f32 %v1748_v24, %v1655_v59  ;;  %v1726_v4 = vmul.f32 %v1718_v52, %v1685_v46  ;;  %v1976_v47 = vpop.eup %1975  ;;  %v1542_v20 = vsel %vm1534_vm12, -1.0, %v3345_v3  ;;  %v1518_v18 = vmul.f32 0.5, %v3176_v10 }
 0x753   :  { %v1755_v43 = vmul.f32 %v1747_v22, %v3270_v28  ;;  %v1741_v5 = vmul.f32 %v1733_v56, %v1670_v16 }
 0x754   :  { %v1796_v38 = vmul.f32 %v1974_v14, %v1756_v41  ;;  %v1734_v57 = vadd.f32 -0.28449672, %v1726_v4 }
 0x755   :  { %v1795_v26 = vmul.f32 %v1972_v23, %v1755_v43  ;;  %v1749_v36 = vadd.f32 0.2548296, %v1741_v5  ;;  %v1978_v37 = vpop.eup %1977 }
 0x756   :  { %v1804_v39 = vsub.f32 1.0, %v1796_v38  ;;  %v1742_v59 = vmul.f32 %v1734_v57, %v1685_v46 }
 0x757   :  { %v1803_v6 = vsub.f32 1.0, %v1795_v26  ;;  %v1757_v28 = vmul.f32 %v1749_v36, %v1670_v16  ;;  %v1541_v16 = vsel %vm1533_vm4, -1.0, %v3345_v3 }
 0x758   :  { %v1812_v35 = vmul.f32 %v1804_v39, %v1540_v25  ;;  %v1750_v34 = vadd.f32 0.2548296, %v1742_v59 }
 0x759   :  { %v1811_v61 = vmul.f32 %v1803_v6, %v1539_v48  ;;  %v1797_v2 = vmul.f32 %v1976_v47, %v1757_v28 }
 0x75a   :  { %v1820_v50 = vadd.f32 1.0, %v1812_v35  ;;  %v1758_v55 = vmul.f32 %v1750_v34, %v1685_v46 }
 0x75b   :  { %v1819_v51 = vadd.f32 1.0, %v1811_v61  ;;  %v1805_v60 = vsub.f32 1.0, %v1797_v2 }
 0x75c   :  { %v1828_v32 = vmul.f32 %v1820_v50, %v1516_v40  ;;  %v1798_v11 = vmul.f32 %v1978_v37, %v1758_v55 }
 0x75d   :  { %v1827_v12 = vmul.f32 %v1819_v51, %v1515_v19  ;;  %v1813_v33 = vmul.f32 %v1805_v60, %v1541_v16 }
 0x75e   :  { %1836 = vst [vmem:[%s3324_s9 + $0x28] sm:$0xff] %v1828_v32  ;;  %v1806_v15 = vsub.f32 1.0, %v1798_v11 }
 0x75f   :  { %1835 = vst [vmem:[%s3324_s9 + $0x20] sm:$0xff] %v1827_v12  ;;  %v1821_v49 = vadd.f32 1.0, %v1813_v33 }
 0x760   :  { %v1814_v9 = vmul.f32 %v1806_v15, %v1542_v20 }
 0x761   :  { %v1829_v27 = vmul.f32 %v1821_v49, %v1517_v45 }
 0x762   :  { %v1822_v44 = vadd.f32 1.0, %v1814_v9 }
 0x763   :  { %1837 = vst [vmem:[%s3324_s9 + $0x30] sm:$0xff] %v1829_v27 }
 0x764   :  { %v1830_v17 = vmul.f32 %v1822_v44, %v1518_v18 }
 0x766   :  { %1838 = vst [vmem:[%s3324_s9 + $0x38] sm:$0xff] %v1830_v17 }

</bundles_post_ra>
